<compile_context>
chip_gen: v5e
topology: v5e:2x2
jax: 0.10.0
libtpu: 0.0.40
codegen_flags: <defaults>
</compile_context>

<pallas_src>
import functools

import jax
import jax.numpy as jnp
from jax import lax
from jax.experimental import pallas as pl
from jax.experimental.pallas import tpu as pltpu

MXU_DTYPE = jnp.bfloat16   # matmul inputs + weight storage (f32 accumulation on MXU)
ACT_DTYPE = jnp.bfloat16   # inter-kernel activation storage (halves HBM traffic)
LN_EPS = 1e-5
VMEM_LIMIT = 64 * 1024 * 1024   # explicit scoped-VMEM budget for the heavy kernels

_ROW_PARAMS = pltpu.CompilerParams(dimension_semantics=("parallel",),
                                   vmem_limit_bytes=VMEM_LIMIT)
_ATTN_PARAMS = pltpu.CompilerParams(dimension_semantics=("parallel", "parallel"),
                                    vmem_limit_bytes=VMEM_LIMIT)


def _pick_row_tile(m, requested):
    """Largest row tile <= requested that divides m and is sublane-aligned (x8)."""
    requested = min(m, 256) if requested is None else min(requested, m)
    for tm in range(requested, 0, -1):
        if m % tm == 0 and (tm % 8 == 0 or tm == m):
            return tm
    return m


# ------------------- Buffered(1) capability probe (single-buffer weights) -------------------

_BUFFERED1_OK = None


def _probe_buffered1():
    """Verify pipeline_mode=pl.Buffered(1) lowers AND runs correctly on this jax/TPU."""
    try:
        def k(x_ref, w_ref, o_ref):
            o_ref[...] = x_ref[...] + w_ref[...]

        f = pl.pallas_call(
            k,
            out_shape=jax.ShapeDtypeStruct((16, 128), jnp.float32),
            grid=(2,),
            in_specs=[
                pl.BlockSpec((8, 128), lambda i: (i, 0)),
                pl.BlockSpec((8, 128), lambda i: (0, 0),
                             pipeline_mode=pl.Buffered(1)),
            ],
            out_specs=pl.BlockSpec((8, 128), lambda i: (i, 0)),
        )
        x = jnp.arange(16 * 128, dtype=jnp.float32).reshape(16, 128)
        w = jnp.ones((8, 128), jnp.float32)
        out = jax.block_until_ready(f(x, w))
        return bool(jnp.all(out == x + 1.0))
    except Exception:
        return False


def _single_buffered():
    global _BUFFERED1_OK
    if _BUFFERED1_OK is None:
        _BUFFERED1_OK = _probe_buffered1()
    return pl.Buffered(1) if _BUFFERED1_OK else None


def _const_spec(shape):
    """BlockSpec for a grid-invariant operand (weights/biases): single-buffered if possible."""
    pm = _single_buffered()
    index_map = lambda *_: (0,) * len(shape)
    if pm is None:
        return pl.BlockSpec(shape, index_map)
    return pl.BlockSpec(shape, index_map, pipeline_mode=pm)


def _layernorm_math(x, gamma, beta, eps):
    mu = jnp.mean(x, axis=-1, keepdims=True)
    xc = x - mu
    var = jnp.mean(xc * xc, axis=-1, keepdims=True)
    return xc * lax.rsqrt(var + eps) * gamma + beta


# --------------------------- embedding LayerNorm ---------------------------

def _layernorm_kernel(x_ref, g_ref, b_ref, o_ref, *, eps):
    x = x_ref[...].astype(jnp.float32)
    o_ref[...] = _layernorm_math(x, g_ref[...], b_ref[...], eps).astype(o_ref.dtype)


def layernorm(x, gamma, beta, *, block_rows=None, eps=LN_EPS):
    m, h = x.shape
    tm = _pick_row_tile(m, block_rows)
    return pl.pallas_call(
        functools.partial(_layernorm_kernel, eps=eps),
        out_shape=jax.ShapeDtypeStruct((m, h), ACT_DTYPE),
        grid=(m // tm,),
        in_specs=[
            pl.BlockSpec((tm, h), lambda i: (i, 0)),
            _const_spec((1, h)),
            _const_spec((1, h)),
        ],
        out_specs=pl.BlockSpec((tm, h), lambda i: (i, 0)),
        compiler_params=_ROW_PARAMS,
    )(x, gamma.reshape(1, h), beta.reshape(1, h))


# ------------------------- fused Q/K/V projection --------------------------
# One (H, 3H) matmul per row tile; emits separate bf16 Q and K|V slabs.

def _qkv_proj_kernel(x_ref, w_ref, b_ref, q_ref, kv_ref):
    x = x_ref[...].astype(MXU_DTYPE)
    y = jnp.dot(x, w_ref[...], preferred_element_type=jnp.float32) + b_ref[...]
    H = q_ref.shape[-1]
    q_ref[...] = y[:, :H].astype(q_ref.dtype)
    kv_ref[...] = y[:, H:].astype(kv_ref.dtype)


def qkv_proj(x, w_qkv, b_qkv, *, block_rows=None):
    m, h = x.shape
    n = w_qkv.shape[1]                      # 3H
    tm = _pick_row_tile(m, block_rows)
    return pl.pallas_call(
        _qkv_proj_kernel,
        out_shape=(jax.ShapeDtypeStruct((m, h), ACT_DTYPE),
                   jax.ShapeDtypeStruct((m, n - h), ACT_DTYPE)),
        grid=(m // tm,),
        in_specs=[
            pl.BlockSpec((tm, h), lambda i: (i, 0)),
            _const_spec((h, n)),
            _const_spec((1, n)),
        ],
        out_specs=(pl.BlockSpec((tm, h), lambda i: (i, 0)),
                   pl.BlockSpec((tm, n - h), lambda i: (i, 0))),
        compiler_params=_ROW_PARAMS,
    )(x, w_qkv, b_qkv.reshape(1, n))


# --------------- q-tiled attention + o_proj + residual + LayerNorm ---------------

def _attn_oproj_ln_kernel(q_ref, kv_ref, mask_ref, res_ref, wo_ref, bo_ref,
                          g_ref, b_ref, o_ref, *, nH, dh, scale, eps):
    H = nH * dh
    q = q_ref[0]                              # (tq, H)  bf16
    kv = kv_ref[0]                            # (S, 2H)  bf16, [K | V]
    mask = mask_ref[0]                        # (1, S)   f32 additive bias

    # TODO(synk): at production dh=64, reorder fused QKV columns / process head
    # pairs so every per-head slice starts on a 128-lane boundary.
    ctx_heads = []
    for h in range(nH):                       # static unroll over heads
        q_h = q[:, h * dh:(h + 1) * dh].astype(MXU_DTYPE)            # (tq, dh)
        k_h = kv[:, h * dh:(h + 1) * dh].astype(MXU_DTYPE)           # (S, dh)
        v_h = kv[:, H + h * dh:H + (h + 1) * dh].astype(MXU_DTYPE)   # (S, dh)
        s = lax.dot_general(q_h, k_h, (((1,), (1,)), ((), ())),
                            preferred_element_type=jnp.float32)      # (tq, S)
        s = s * scale + mask
        m = jnp.max(s, axis=-1, keepdims=True)
        p = jnp.exp(s - m)
        p = p * pl.reciprocal(jnp.sum(p, axis=-1, keepdims=True), approx=True)
        ctx_heads.append(jnp.dot(p.astype(MXU_DTYPE), v_h,
                                 preferred_element_type=jnp.float32))  # (tq, dh)

    # Concatenate heads and do ONE full-K output projection (better MXU depth
    # utilization than folding W_o per head; removes nH full-width f32 adds).
    ctx = jnp.concatenate(ctx_heads, axis=-1).astype(MXU_DTYPE)        # (tq, H)
    y = jnp.dot(ctx, wo_ref[...], preferred_element_type=jnp.float32) + bo_ref[...]
    x = y + res_ref[0].astype(jnp.float32)
    o_ref[0] = _layernorm_math(x, g_ref[...], b_ref[...], eps).astype(o_ref.dtype)


def attention_block(q, kv, mask_bias, residual, wo, bo, gamma, beta, *, nH, dh,
                    q_tile=None, eps=LN_EPS):
    B, S, H = q.shape
    tq = _pick_row_tile(S, q_tile)
    scale = 1.0 / float(dh) ** 0.5
    return pl.pallas_call(
        functools.partial(_attn_oproj_ln_kernel, nH=nH, dh=dh, scale=scale, eps=eps),
        out_shape=jax.ShapeDtypeStruct((B, S, H), ACT_DTYPE),
        grid=(B, S // tq),
        in_specs=[
            pl.BlockSpec((1, tq, H), lambda b, i: (b, i, 0)),       # Q tile
            pl.BlockSpec((1, S, 2 * H), lambda b, i: (b, 0, 0)),    # full K|V for batch b
            pl.BlockSpec((1, 1, S), lambda b, i: (b, 0, 0)),        # additive mask
            pl.BlockSpec((1, tq, H), lambda b, i: (b, i, 0)),       # residual tile
            _const_spec((H, H)),                                    # W_o (bf16)
            _const_spec((1, H)),                                    # b_o
            _const_spec((1, H)),                                    # gamma
            _const_spec((1, H)),                                    # beta
        ],
        out_specs=pl.BlockSpec((1, tq, H), lambda b, i: (b, i, 0)),
        compiler_params=_ATTN_PARAMS,
    )(q, kv, mask_bias, residual, wo, bo.reshape(1, H), gamma.reshape(1, H),
      beta.reshape(1, H))


# ----------- fused FFN + bottleneck adapter + residual + LayerNorm -----------

def _ffn_adapter_ln_kernel(h_ref, w1_ref, b1_ref, w2_ref, b2_ref,
                           adw_ref, adb_ref, auw_ref, aub_ref,
                           g_ref, bb_ref, o_ref, *, eps):
    h_in = h_ref[...]                                           # (tm, H) bf16
    # FFN: w1 -> gelu -> w2   ((tm, FFN) intermediate never leaves VMEM/vregs)
    ff = jnp.dot(h_in.astype(MXU_DTYPE), w1_ref[...],
                 preferred_element_type=jnp.float32) + b1_ref[...]
    # TODO(synk): HF RoBERTa uses exact (erf) GELU; tanh approximation kept for
    # guaranteed Mosaic lowering across jax versions.
    ff = jax.nn.gelu(ff, approximate=True)
    ff = jnp.dot(ff.astype(MXU_DTYPE), w2_ref[...],
                 preferred_element_type=jnp.float32) + b2_ref[...]
    # Pfeiffer bottleneck adapter on the FFN output, with adapter residual.
    ad = jnp.dot(ff.astype(MXU_DTYPE), adw_ref[...],
                 preferred_element_type=jnp.float32) + adb_ref[...]
    ad = jnp.maximum(ad, 0.0)
    ad = jnp.dot(ad.astype(MXU_DTYPE), auw_ref[...],
                 preferred_element_type=jnp.float32) + aub_ref[...]
    x = ff + ad + h_in.astype(jnp.float32)      # adapter residual + sublayer residual
    o_ref[...] = _layernorm_math(x, g_ref[...], bb_ref[...], eps).astype(o_ref.dtype)


def ffn_adapter_block(h, lp, *, block_rows=None, eps=LN_EPS):
    m, H = h.shape
    F = lp["w1"].shape[1]
    A = lp["ad_down_w"].shape[1]
    tm = _pick_row_tile(m, block_rows)
    return pl.pallas_call(
        functools.partial(_ffn_adapter_ln_kernel, eps=eps),
        out_shape=jax.ShapeDtypeStruct((m, H), ACT_DTYPE),
        grid=(m // tm,),
        in_specs=[
            pl.BlockSpec((tm, H), lambda i: (i, 0)),
            _const_spec((H, F)),
            _const_spec((1, F)),
            _const_spec((F, H)),
            _const_spec((1, H)),
            _const_spec((H, A)),
            _const_spec((1, A)),
            _const_spec((A, H)),
            _const_spec((1, H)),
            _const_spec((1, H)),
            _const_spec((1, H)),
        ],
        out_specs=pl.BlockSpec((tm, H), lambda i: (i, 0)),
        compiler_params=_ROW_PARAMS,
    )(h, lp["w1"], lp["b1"].reshape(1, F), lp["w2"], lp["b2"].reshape(1, H),
      lp["ad_down_w"], lp["ad_down_b"].reshape(1, A),
      lp["ad_up_w"], lp["ad_up_b"].reshape(1, H),
      lp["ln2_g"].reshape(1, H), lp["ln2_b"].reshape(1, H))


# ------------------- classification head (dense->tanh->out) -------------------

def _cls_head_kernel(x_ref, wd_ref, bd_ref, wo_ref, bo_ref, o_ref):
    x = x_ref[...].astype(MXU_DTYPE)
    hcls = jnp.dot(x, wd_ref[...], preferred_element_type=jnp.float32) + bd_ref[...]
    hcls = jnp.tanh(hcls)
    o_ref[...] = (jnp.dot(hcls.astype(MXU_DTYPE), wo_ref[...],
                          preferred_element_type=jnp.float32) + bo_ref[...]
                  ).astype(o_ref.dtype)


def classification_head(cls_repr, wd, bd, wo_pad, bo_pad, num_classes):
    b, h = cls_repr.shape
    c_pad = wo_pad.shape[1]
    logits_p = pl.pallas_call(
        _cls_head_kernel,
        out_shape=jax.ShapeDtypeStruct((b, c_pad), jnp.float32),
        grid=(1,),
        in_specs=[
            pl.BlockSpec((b, h), lambda i: (0, 0)),
            _const_spec((h, h)),
            _const_spec((1, h)),
            _const_spec((h, c_pad)),
            _const_spec((1, c_pad)),
        ],
        out_specs=pl.BlockSpec((b, c_pad), lambda i: (0, 0)),
        compiler_params=pltpu.CompilerParams(vmem_limit_bytes=VMEM_LIMIT),
    )(cls_repr, wd, bd.reshape(1, h), wo_pad, bo_pad)
    return logits_p[:, :num_classes]


# ------------------------------ model definition ------------------------------

def init_params(key, *, vocab, max_pos, H, nH, ffn, n_layers, adapter_dim, num_classes):
    def nrm(k, shape, dtype=MXU_DTYPE):
        # matmul weights stored in bf16 ONCE (halves weight DMA + VMEM footprint)
        return (jax.random.normal(k, shape, jnp.float32) * 0.02).astype(dtype)

    keys = iter(jax.random.split(key, 8 + n_layers * 16))
    c_pad = max(128, ((num_classes + 127) // 128) * 128)
    p = {
        "word_emb": jax.random.normal(next(keys), (vocab, H), jnp.float32) * 0.02,
        "pos_emb": jax.random.normal(next(keys), (max_pos, H), jnp.float32) * 0.02,
        "emb_ln_g": jnp.ones((H,), jnp.float32),
        "emb_ln_b": jnp.zeros((H,), jnp.float32),
        "cls_dense_w": nrm(next(keys), (H, H)),
        "cls_dense_b": jnp.zeros((H,), jnp.float32),
        # out-projection pre-padded to a lane-dense 128-wide slab (unmasked vst),
        # built once here instead of every forward call.
        "cls_out_w_pad": jnp.zeros((H, c_pad), MXU_DTYPE).at[:, :num_classes].set(
            nrm(next(keys), (H, num_classes))),
        "cls_out_b_pad": jnp.zeros((1, c_pad), jnp.float32),
        "layers": [],
    }
    for _ in range(n_layers):
        lp = {
            # fused QKV projection weight: columns are [Wq | Wk | Wv]
            "w_qkv": nrm(next(keys), (H, 3 * H)),
            "b_qkv": jnp.zeros((3 * H,), jnp.float32),
            "wo": nrm(next(keys), (H, H)), "bo": jnp.zeros((H,), jnp.float32),
            "ln1_g": jnp.ones((H,), jnp.float32), "ln1_b": jnp.zeros((H,), jnp.float32),
            "w1": nrm(next(keys), (H, ffn)), "b1": jnp.zeros((ffn,), jnp.float32),
            "w2": nrm(next(keys), (ffn, H)), "b2": jnp.zeros((H,), jnp.float32),
            # Pfeiffer-style bottleneck adapter (the trainable part in the original).
            "ad_down_w": nrm(next(keys), (H, adapter_dim)),
            "ad_down_b": jnp.zeros((adapter_dim,), jnp.float32),
            "ad_up_w": nrm(next(keys), (adapter_dim, H)),
            "ad_up_b": jnp.zeros((H,), jnp.float32),
            "ln2_g": jnp.ones((H,), jnp.float32), "ln2_b": jnp.zeros((H,), jnp.float32),
        }
        p["layers"].append(lp)
    return p


def encoder_layer(lp, x2, mask_bias, B, S, H, nH, dh, block_rows):
    # 1) fused QKV projection; x2 read from HBM exactly once; Q and K|V emitted
    #    as separate bf16 slabs so attention streams only what it needs.
    q, kv = qkv_proj(x2, lp["w_qkv"], lp["b_qkv"], block_rows=block_rows)
    # 2) q-tiled attention + output projection + residual + LayerNorm; heads are
    #    split in-kernel, contexts concatenated, single W_o matmul.
    h = attention_block(q.reshape(B, S, H), kv.reshape(B, S, 2 * H), mask_bias,
                        x2.reshape(B, S, H), lp["wo"], lp["bo"],
                        lp["ln1_g"], lp["ln1_b"], nH=nH, dh=dh)
    h = h.reshape(B * S, H)
    # 3) FFN + bottleneck adapter + residual + LayerNorm, fused per row tile.
    return ffn_adapter_block(h, lp, block_rows=block_rows)


def text_bert_adapter_forward(params, input_ids, attention_mask, *, nH, dh,
                              num_classes, block_rows=None):
    B, S = input_ids.shape
    H = nH * dh
    # Embedding gather stays in plain JAX (data-dependent gather, not a hot matmul).
    # TODO(synk): RoBERTa's padding-aware position ids are simplified to arange(S).
    x = params["word_emb"][input_ids] + params["pos_emb"][:S][None, :, :]
    x2 = layernorm(x.reshape(B * S, H), params["emb_ln_g"], params["emb_ln_b"],
                   block_rows=block_rows)

    mask_bias = ((1.0 - attention_mask.astype(jnp.float32)) * -1e9).reshape(B, 1, S)
    for lp in params["layers"]:
        x2 = encoder_layer(lp, x2, mask_bias, B, S, H, nH, dh, block_rows)

    hidden = x2.reshape(B, S, H)
    cls_repr = hidden[:, 0, :].astype(jnp.float32)    # last hidden state, <s> token
    logits = classification_head(cls_repr, params["cls_dense_w"],
                                 params["cls_dense_b"], params["cls_out_w_pad"],
                                 params["cls_out_b_pad"], num_classes)
    return {"logits": logits, "cls_repr": cls_repr}


# ------------------------------------ main ------------------------------------

if __name__ == "__main__":
    B, S = 2, 8
    H, nH = 32, 4
    dh = H // nH
    FFN = 64
    N_LAYERS = 2
    ADAPTER_DIM = 8
    NUM_CLASSES = 3
    VOCAB, MAX_POS = 100, 64

    key = jax.random.PRNGKey(0)
    k_params, k_ids = jax.random.split(key)
    params = init_params(k_params, vocab=VOCAB, max_pos=MAX_POS, H=H, nH=nH,
                         ffn=FFN, n_layers=N_LAYERS, adapter_dim=ADAPTER_DIM,
                         num_classes=NUM_CLASSES)

    input_ids = jax.random.randint(k_ids, (B, S), 0, VOCAB, dtype=jnp.int32)
    attention_mask = jnp.array([[1, 1, 1, 1, 1, 1, 0, 0],
                                [1, 1, 1, 1, 0, 0, 0, 0]], dtype=jnp.int32)

    # Run the Buffered(1) capability probe eagerly (outside jit) once.
    _single_buffered()

    # block_rows=8 exercises a multi-step, double-buffered row grid even at these
    # tiny demo shapes; at real RoBERTa sizes use 256/512-row tiles (sweep).
    fwd = jax.jit(functools.partial(text_bert_adapter_forward, nH=nH, dh=dh,
                                    num_classes=NUM_CLASSES, block_rows=8))
    out = fwd(params, input_ids, attention_mask)
    jax.block_until_ready(out)

    assert out["logits"].shape == (B, NUM_CLASSES)
    assert out["cls_repr"].shape == (B, H)
    assert jnp.all(jnp.isfinite(out["logits"])) and jnp.all(jnp.isfinite(out["cls_repr"]))
    print("KERNEL_OK")
</pallas_src>

<mosaic_0001>
module attributes {stable_mosaic.version = 11 : i64} {
  func.func @k(%arg0: i32, %arg1: memref<8x128xf32, #tpu.memory_space<vmem>>, %arg2: memref<8x128xf32, #tpu.memory_space<vmem>>, %arg3: memref<8x128xf32, #tpu.memory_space<vmem>>) attributes {dimension_semantics = [#tpu.dimension_semantics<arbitrary>], iteration_bounds = array<i64: 2>, scalar_prefetch = 0 : i64, scratch_operands = 0 : i64, tpu.core_type = #tpu.core_type<tc>, window_params = [{transform_indices = @transform_0, window_bounds = array<i64: 8, 128>}, {pipeline_mode = #tpu.pipeline_mode<synchronous>, transform_indices = @transform_1, window_bounds = array<i64: 8, 128>}, {transform_indices = @transform_2, window_bounds = array<i64: 8, 128>}]} {
    %c0 = arith.constant 0 : index
    %c0_0 = arith.constant 0 : index
    %0 = vector.load %arg1[%c0, %c0_0] : memref<8x128xf32, #tpu.memory_space<vmem>>, vector<8x128xf32>
    %c0_1 = arith.constant 0 : index
    %c0_2 = arith.constant 0 : index
    %1 = vector.load %arg2[%c0_1, %c0_2] : memref<8x128xf32, #tpu.memory_space<vmem>>, vector<8x128xf32>
    %2 = arith.addf %0, %1 : vector<8x128xf32>
    %c0_3 = arith.constant 0 : index
    %c0_4 = arith.constant 0 : index
    %3 = vector.load %arg3[%c0_3, %c0_4] : memref<8x128xf32, #tpu.memory_space<vmem>>, vector<8x128xf32>
    tpu.vector_store %arg3[%c0_3, %c0_4], %2 {strides = array<i32>} : memref<8x128xf32, #tpu.memory_space<vmem>>, vector<8x128xf32>,
    return
  }
  func.func @transform_0(%arg0: i32) -> (i32, i32) {
    %c0_i32 = arith.constant 0 : i32
    %c0_i32_0 = arith.constant 0 : i32
    return %arg0, %c0_i32 : i32, i32
  }
  func.func @transform_1(%arg0: i32) -> (i32, i32) {
    %c0_i32 = arith.constant 0 : i32
    %c0_i32_0 = arith.constant 0 : i32
    %c0_i32_1 = arith.constant 0 : i32
    return %c0_i32, %c0_i32_0 : i32, i32
  }
  func.func @transform_2(%arg0: i32) -> (i32, i32) {
    %c0_i32 = arith.constant 0 : i32
    %c0_i32_0 = arith.constant 0 : i32
    return %arg0, %c0_i32 : i32, i32
  }
}

module attributes {stable_mosaic.version = 11 : i64} {
  func.func @_qkv_proj_kernel(%arg0: i32, %arg1: memref<8x32xbf16, #tpu.memory_space<vmem>>, %arg2: memref<32x96xbf16, #tpu.memory_space<vmem>>, %arg3: memref<1x96xf32, #tpu.memory_space<vmem>>, %arg4: memref<8x32xbf16, #tpu.memory_space<vmem>>, %arg5: memref<8x64xbf16, #tpu.memory_space<vmem>>) attributes {dimension_semantics = [#tpu.dimension_semantics<parallel>], iteration_bounds = array<i64: 2>, scalar_prefetch = 0 : i64, scratch_operands = 0 : i64, tpu.core_type = #tpu.core_type<tc>, window_params = [{transform_indices = @transform_0, window_bounds = array<i64: 8, 32>}, {pipeline_mode = #tpu.pipeline_mode<synchronous>, transform_indices = @transform_1, window_bounds = array<i64: 32, 96>}, {pipeline_mode = #tpu.pipeline_mode<synchronous>, transform_indices = @transform_2, window_bounds = array<i64: 1, 96>}, {transform_indices = @transform_3, window_bounds = array<i64: 8, 32>}, {transform_indices = @transform_4, window_bounds = array<i64: 8, 64>}]} {
    %c0 = arith.constant 0 : index
    %c0_0 = arith.constant 0 : index
    %0 = vector.load %arg1[%c0, %c0_0] : memref<8x32xbf16, #tpu.memory_space<vmem>>, vector<8x32xbf16>
    %c0_1 = arith.constant 0 : index
    %c0_2 = arith.constant 0 : index
    %1 = vector.load %arg2[%c0_1, %c0_2] : memref<32x96xbf16, #tpu.memory_space<vmem>>, vector<32x96xbf16>
    %cst = arith.constant dense<0.000000e+00> : vector<8x96xf32>
    %2 = tpu.matmul %0, %1, %cst {dimension_numbers = #tpu.dot_dimension_numbers<[1], [0], [0], [1], [0, 0, 1, 1], [], []>} : vector<8x32xbf16>, vector<32x96xbf16>, vector<8x96xf32> -> vector<8x96xf32>
    %c0_3 = arith.constant 0 : index
    %c0_4 = arith.constant 0 : index
    %3 = vector.load %arg3[%c0_3, %c0_4] : memref<1x96xf32, #tpu.memory_space<vmem>>, vector<1x96xf32>
    %4 = vector.broadcast %3 : vector<1x96xf32> to vector<8x96xf32>
    %5 = arith.addf %2, %4 : vector<8x96xf32>
    %6 = vector.extract_strided_slice %5 {offsets = [0, 0], sizes = [8, 32], strides = [1, 1]} : vector<8x96xf32> to vector<8x32xf32>
    %7 = arith.truncf %6 : vector<8x32xf32> to vector<8x32xbf16>
    %c0_5 = arith.constant 0 : index
    %c0_6 = arith.constant 0 : index
    %8 = vector.load %arg4[%c0_5, %c0_6] : memref<8x32xbf16, #tpu.memory_space<vmem>>, vector<8x32xbf16>
    tpu.vector_store %arg4[%c0_5, %c0_6], %7 {strides = array<i32>} : memref<8x32xbf16, #tpu.memory_space<vmem>>, vector<8x32xbf16>,
    %9 = vector.extract_strided_slice %5 {offsets = [0, 32], sizes = [8, 64], strides = [1, 1]} : vector<8x96xf32> to vector<8x64xf32>
    %10 = arith.truncf %9 : vector<8x64xf32> to vector<8x64xbf16>
    %c0_7 = arith.constant 0 : index
    %c0_8 = arith.constant 0 : index
    %11 = vector.load %arg5[%c0_7, %c0_8] : memref<8x64xbf16, #tpu.memory_space<vmem>>, vector<8x64xbf16>
    tpu.vector_store %arg5[%c0_7, %c0_8], %10 {strides = array<i32>} : memref<8x64xbf16, #tpu.memory_space<vmem>>, vector<8x64xbf16>,
    return
  }
  func.func @transform_0(%arg0: i32) -> (i32, i32) {
    %c0_i32 = arith.constant 0 : i32
    %c0_i32_0 = arith.constant 0 : i32
    return %arg0, %c0_i32 : i32, i32
  }
  func.func @transform_1(%arg0: i32) -> (i32, i32) {
    %c0_i32 = arith.constant 0 : i32
    %c0_i32_0 = arith.constant 0 : i32
    %c0_i32_1 = arith.constant 0 : i32
    return %c0_i32, %c0_i32_0 : i32, i32
  }
  func.func @transform_2(%arg0: i32) -> (i32, i32) {
    %c0_i32 = arith.constant 0 : i32
    %c0_i32_0 = arith.constant 0 : i32
    %c0_i32_1 = arith.constant 0 : i32
    return %c0_i32, %c0_i32_0 : i32, i32
  }
  func.func @transform_3(%arg0: i32) -> (i32, i32) {
    %c0_i32 = arith.constant 0 : i32
    %c0_i32_0 = arith.constant 0 : i32
    return %arg0, %c0_i32 : i32, i32
  }
  func.func @transform_4(%arg0: i32) -> (i32, i32) {
    %c0_i32 = arith.constant 0 : i32
    %c0_i32_0 = arith.constant 0 : i32
    return %arg0, %c0_i32 : i32, i32
  }
}

module attributes {stable_mosaic.version = 11 : i64} {
  func.func @_layernorm_kernel(%arg0: i32, %arg1: memref<8x32xf32, #tpu.memory_space<vmem>>, %arg2: memref<1x32xf32, #tpu.memory_space<vmem>>, %arg3: memref<1x32xf32, #tpu.memory_space<vmem>>, %arg4: memref<8x32xbf16, #tpu.memory_space<vmem>>) attributes {dimension_semantics = [#tpu.dimension_semantics<parallel>], iteration_bounds = array<i64: 2>, scalar_prefetch = 0 : i64, scratch_operands = 0 : i64, tpu.core_type = #tpu.core_type<tc>, window_params = [{transform_indices = @transform_0, window_bounds = array<i64: 8, 32>}, {pipeline_mode = #tpu.pipeline_mode<synchronous>, transform_indices = @transform_1, window_bounds = array<i64: 1, 32>}, {pipeline_mode = #tpu.pipeline_mode<synchronous>, transform_indices = @transform_2, window_bounds = array<i64: 1, 32>}, {transform_indices = @transform_3, window_bounds = array<i64: 8, 32>}]} {
    %c0 = arith.constant 0 : index
    %c0_0 = arith.constant 0 : index
    %0 = vector.load %arg1[%c0, %c0_0] : memref<8x32xf32, #tpu.memory_space<vmem>>, vector<8x32xf32>
    %c0_1 = arith.constant 0 : index
    %c0_2 = arith.constant 0 : index
    %1 = vector.load %arg2[%c0_1, %c0_2] : memref<1x32xf32, #tpu.memory_space<vmem>>, vector<1x32xf32>
    %c0_3 = arith.constant 0 : index
    %c0_4 = arith.constant 0 : index
    %2 = vector.load %arg3[%c0_3, %c0_4] : memref<1x32xf32, #tpu.memory_space<vmem>>, vector<1x32xf32>
    %cst = arith.constant dense<0.000000e+00> : vector<8xf32>
    %3 = vector.multi_reduction <add>, %0, %cst [1] : vector<8x32xf32> to vector<8xf32>
    %4 = vector.shape_cast %3 : vector<8xf32> to vector<8x1xf32>
    %cst_5 = arith.constant 3.200000e+01 : f32
    %5 = vector.broadcast %cst_5 : f32 to vector<8x1xf32>
    %6 = arith.divf %4, %5 : vector<8x1xf32>
    %7 = vector.broadcast %6 : vector<8x1xf32> to vector<8x32xf32>
    %8 = arith.subf %0, %7 : vector<8x32xf32>
    %9 = arith.mulf %8, %8 : vector<8x32xf32>
    %cst_6 = arith.constant dense<0.000000e+00> : vector<8xf32>
    %10 = vector.multi_reduction <add>, %9, %cst_6 [1] : vector<8x32xf32> to vector<8xf32>
    %11 = vector.shape_cast %10 : vector<8xf32> to vector<8x1xf32>
    %cst_7 = arith.constant 3.200000e+01 : f32
    %12 = vector.broadcast %cst_7 : f32 to vector<8x1xf32>
    %13 = arith.divf %11, %12 : vector<8x1xf32>
    %cst_8 = arith.constant 9.99999974E-6 : f32
    %14 = vector.broadcast %cst_8 : f32 to vector<8x1xf32>
    %15 = arith.addf %13, %14 : vector<8x1xf32>
    %16 = math.rsqrt %15 : vector<8x1xf32>
    %17 = vector.broadcast %16 : vector<8x1xf32> to vector<8x32xf32>
    %18 = arith.mulf %8, %17 : vector<8x32xf32>
    %19 = vector.broadcast %1 : vector<1x32xf32> to vector<8x32xf32>
    %20 = arith.mulf %18, %19 : vector<8x32xf32>
    %21 = vector.broadcast %2 : vector<1x32xf32> to vector<8x32xf32>
    %22 = arith.addf %20, %21 : vector<8x32xf32>
    %23 = arith.truncf %22 : vector<8x32xf32> to vector<8x32xbf16>
    %c0_9 = arith.constant 0 : index
    %c0_10 = arith.constant 0 : index
    %24 = vector.load %arg4[%c0_9, %c0_10] : memref<8x32xbf16, #tpu.memory_space<vmem>>, vector<8x32xbf16>
    tpu.vector_store %arg4[%c0_9, %c0_10], %23 {strides = array<i32>} : memref<8x32xbf16, #tpu.memory_space<vmem>>, vector<8x32xbf16>,
    return
  }
  func.func @transform_0(%arg0: i32) -> (i32, i32) {
    %c0_i32 = arith.constant 0 : i32
    %c0_i32_0 = arith.constant 0 : i32
    return %arg0, %c0_i32 : i32, i32
  }
  func.func @transform_1(%arg0: i32) -> (i32, i32) {
    %c0_i32 = arith.constant 0 : i32
    %c0_i32_0 = arith.constant 0 : i32
    %c0_i32_1 = arith.constant 0 : i32
    return %c0_i32, %c0_i32_0 : i32, i32
  }
  func.func @transform_2(%arg0: i32) -> (i32, i32) {
    %c0_i32 = arith.constant 0 : i32
    %c0_i32_0 = arith.constant 0 : i32
    %c0_i32_1 = arith.constant 0 : i32
    return %c0_i32, %c0_i32_0 : i32, i32
  }
  func.func @transform_3(%arg0: i32) -> (i32, i32) {
    %c0_i32 = arith.constant 0 : i32
    %c0_i32_0 = arith.constant 0 : i32
    return %arg0, %c0_i32 : i32, i32
  }
}

module attributes {stable_mosaic.version = 11 : i64} {
  func.func @_attn_oproj_ln_kernel(%arg0: i32, %arg1: i32, %arg2: memref<1x8x32xbf16, #tpu.memory_space<vmem>>, %arg3: memref<1x8x64xbf16, #tpu.memory_space<vmem>>, %arg4: memref<1x1x8xf32, #tpu.memory_space<vmem>>, %arg5: memref<1x8x32xbf16, #tpu.memory_space<vmem>>, %arg6: memref<32x32xbf16, #tpu.memory_space<vmem>>, %arg7: memref<1x32xf32, #tpu.memory_space<vmem>>, %arg8: memref<1x32xf32, #tpu.memory_space<vmem>>, %arg9: memref<1x32xf32, #tpu.memory_space<vmem>>, %arg10: memref<1x8x32xbf16, #tpu.memory_space<vmem>>) attributes {dimension_semantics = [#tpu.dimension_semantics<parallel>, #tpu.dimension_semantics<parallel>], iteration_bounds = array<i64: 2, 1>, scalar_prefetch = 0 : i64, scratch_operands = 0 : i64, tpu.core_type = #tpu.core_type<tc>, window_params = [{transform_indices = @transform_0, window_bounds = array<i64: 1, 8, 32>}, {transform_indices = @transform_1, window_bounds = array<i64: 1, 8, 64>}, {transform_indices = @transform_2, window_bounds = array<i64: 1, 1, 8>}, {transform_indices = @transform_3, window_bounds = array<i64: 1, 8, 32>}, {pipeline_mode = #tpu.pipeline_mode<synchronous>, transform_indices = @transform_4, window_bounds = array<i64: 32, 32>}, {pipeline_mode = #tpu.pipeline_mode<synchronous>, transform_indices = @transform_5, window_bounds = array<i64: 1, 32>}, {pipeline_mode = #tpu.pipeline_mode<synchronous>, transform_indices = @transform_6, window_bounds = array<i64: 1, 32>}, {pipeline_mode = #tpu.pipeline_mode<synchronous>, transform_indices = @transform_7, window_bounds = array<i64: 1, 32>}, {transform_indices = @transform_8, window_bounds = array<i64: 1, 8, 32>}]} {
    %c0 = arith.constant 0 : index
    %c0_0 = arith.constant 0 : index
    %c0_1 = arith.constant 0 : index
    %0 = vector.load %arg2[%c0, %c0_0, %c0_1] : memref<1x8x32xbf16, #tpu.memory_space<vmem>>, vector<1x8x32xbf16>
    %1 = vector.shape_cast %0 : vector<1x8x32xbf16> to vector<8x32xbf16>
    %c0_2 = arith.constant 0 : index
    %c0_3 = arith.constant 0 : index
    %c0_4 = arith.constant 0 : index
    %2 = vector.load %arg3[%c0_2, %c0_3, %c0_4] : memref<1x8x64xbf16, #tpu.memory_space<vmem>>, vector<1x8x64xbf16>
    %3 = vector.shape_cast %2 : vector<1x8x64xbf16> to vector<8x64xbf16>
    %c0_5 = arith.constant 0 : index
    %c0_6 = arith.constant 0 : index
    %c0_7 = arith.constant 0 : index
    %4 = vector.load %arg4[%c0_5, %c0_6, %c0_7] : memref<1x1x8xf32, #tpu.memory_space<vmem>>, vector<1x1x8xf32>
    %5 = vector.shape_cast %4 : vector<1x1x8xf32> to vector<1x8xf32>
    %6 = vector.extract_strided_slice %1 {offsets = [0, 0], sizes = [8, 8], strides = [1, 1]} : vector<8x32xbf16> to vector<8x8xbf16>
    %7 = vector.extract_strided_slice %3 {offsets = [0, 0], sizes = [8, 8], strides = [1, 1]} : vector<8x64xbf16> to vector<8x8xbf16>
    %8 = vector.extract_strided_slice %3 {offsets = [0, 32], sizes = [8, 8], strides = [1, 1]} : vector<8x64xbf16> to vector<8x8xbf16>
    %cst = arith.constant dense<0.000000e+00> : vector<8x8xf32>
    %9 = tpu.matmul %6, %7, %cst {dimension_numbers = #tpu.dot_dimension_numbers<[1], [1], [0], [0], [0, 0, 1, 0], [], []>} : vector<8x8xbf16>, vector<8x8xbf16>, vector<8x8xf32> -> vector<8x8xf32>
    %cst_8 = arith.constant 0.353553385 : f32
    %10 = vector.broadcast %cst_8 : f32 to vector<8x8xf32>
    %11 = arith.mulf %9, %10 : vector<8x8xf32>
    %12 = vector.broadcast %5 : vector<1x8xf32> to vector<8x8xf32>
    %13 = arith.addf %11, %12 : vector<8x8xf32>
    %cst_9 = arith.constant dense<0xFF800000> : vector<8xf32>
    %14 = vector.multi_reduction <maximumf>, %13, %cst_9 [1] : vector<8x8xf32> to vector<8xf32>
    %15 = vector.shape_cast %14 : vector<8xf32> to vector<8x1xf32>
    %16 = vector.broadcast %15 : vector<8x1xf32> to vector<8x8xf32>
    %17 = arith.subf %13, %16 : vector<8x8xf32>
    %18 = math.exp %17 : vector<8x8xf32>
    %cst_10 = arith.constant dense<0.000000e+00> : vector<8xf32>
    %19 = vector.multi_reduction <add>, %18, %cst_10 [1] : vector<8x8xf32> to vector<8xf32>
    %20 = vector.shape_cast %19 : vector<8xf32> to vector<8x1xf32>
    %21 = tpu.reciprocal %20 {approx = true} : vector<8x1xf32> -> vector<8x1xf32>
    %22 = vector.broadcast %21 : vector<8x1xf32> to vector<8x8xf32>
    %23 = arith.mulf %18, %22 : vector<8x8xf32>
    %24 = arith.truncf %23 : vector<8x8xf32> to vector<8x8xbf16>
    %cst_11 = arith.constant dense<0.000000e+00> : vector<8x8xf32>
    %25 = tpu.matmul %24, %8, %cst_11 {dimension_numbers = #tpu.dot_dimension_numbers<[1], [0], [0], [1], [0, 0, 1, 1], [], []>} : vector<8x8xbf16>, vector<8x8xbf16>, vector<8x8xf32> -> vector<8x8xf32>
    %26 = vector.extract_strided_slice %1 {offsets = [0, 8], sizes = [8, 8], strides = [1, 1]} : vector<8x32xbf16> to vector<8x8xbf16>
    %27 = vector.extract_strided_slice %3 {offsets = [0, 8], sizes = [8, 8], strides = [1, 1]} : vector<8x64xbf16> to vector<8x8xbf16>
    %28 = vector.extract_strided_slice %3 {offsets = [0, 40], sizes = [8, 8], strides = [1, 1]} : vector<8x64xbf16> to vector<8x8xbf16>
    %cst_12 = arith.constant dense<0.000000e+00> : vector<8x8xf32>
    %29 = tpu.matmul %26, %27, %cst_12 {dimension_numbers = #tpu.dot_dimension_numbers<[1], [1], [0], [0], [0, 0, 1, 0], [], []>} : vector<8x8xbf16>, vector<8x8xbf16>, vector<8x8xf32> -> vector<8x8xf32>
    %cst_13 = arith.constant 0.353553385 : f32
    %30 = vector.broadcast %cst_13 : f32 to vector<8x8xf32>
    %31 = arith.mulf %29, %30 : vector<8x8xf32>
    %32 = vector.broadcast %5 : vector<1x8xf32> to vector<8x8xf32>
    %33 = arith.addf %31, %32 : vector<8x8xf32>
    %cst_14 = arith.constant dense<0xFF800000> : vector<8xf32>
    %34 = vector.multi_reduction <maximumf>, %33, %cst_14 [1] : vector<8x8xf32> to vector<8xf32>
    %35 = vector.shape_cast %34 : vector<8xf32> to vector<8x1xf32>
    %36 = vector.broadcast %35 : vector<8x1xf32> to vector<8x8xf32>
    %37 = arith.subf %33, %36 : vector<8x8xf32>
    %38 = math.exp %37 : vector<8x8xf32>
    %cst_15 = arith.constant dense<0.000000e+00> : vector<8xf32>
    %39 = vector.multi_reduction <add>, %38, %cst_15 [1] : vector<8x8xf32> to vector<8xf32>
    %40 = vector.shape_cast %39 : vector<8xf32> to vector<8x1xf32>
    %41 = tpu.reciprocal %40 {approx = true} : vector<8x1xf32> -> vector<8x1xf32>
    %42 = vector.broadcast %41 : vector<8x1xf32> to vector<8x8xf32>
    %43 = arith.mulf %38, %42 : vector<8x8xf32>
    %44 = arith.truncf %43 : vector<8x8xf32> to vector<8x8xbf16>
    %cst_16 = arith.constant dense<0.000000e+00> : vector<8x8xf32>
    %45 = tpu.matmul %44, %28, %cst_16 {dimension_numbers = #tpu.dot_dimension_numbers<[1], [0], [0], [1], [0, 0, 1, 1], [], []>} : vector<8x8xbf16>, vector<8x8xbf16>, vector<8x8xf32> -> vector<8x8xf32>
    %46 = vector.extract_strided_slice %1 {offsets = [0, 16], sizes = [8, 8], strides = [1, 1]} : vector<8x32xbf16> to vector<8x8xbf16>
    %47 = vector.extract_strided_slice %3 {offsets = [0, 16], sizes = [8, 8], strides = [1, 1]} : vector<8x64xbf16> to vector<8x8xbf16>
    %48 = vector.extract_strided_slice %3 {offsets = [0, 48], sizes = [8, 8], strides = [1, 1]} : vector<8x64xbf16> to vector<8x8xbf16>
    %cst_17 = arith.constant dense<0.000000e+00> : vector<8x8xf32>
    %49 = tpu.matmul %46, %47, %cst_17 {dimension_numbers = #tpu.dot_dimension_numbers<[1], [1], [0], [0], [0, 0, 1, 0], [], []>} : vector<8x8xbf16>, vector<8x8xbf16>, vector<8x8xf32> -> vector<8x8xf32>
    %cst_18 = arith.constant 0.353553385 : f32
    %50 = vector.broadcast %cst_18 : f32 to vector<8x8xf32>
    %51 = arith.mulf %49, %50 : vector<8x8xf32>
    %52 = vector.broadcast %5 : vector<1x8xf32> to vector<8x8xf32>
    %53 = arith.addf %51, %52 : vector<8x8xf32>
    %cst_19 = arith.constant dense<0xFF800000> : vector<8xf32>
    %54 = vector.multi_reduction <maximumf>, %53, %cst_19 [1] : vector<8x8xf32> to vector<8xf32>
    %55 = vector.shape_cast %54 : vector<8xf32> to vector<8x1xf32>
    %56 = vector.broadcast %55 : vector<8x1xf32> to vector<8x8xf32>
    %57 = arith.subf %53, %56 : vector<8x8xf32>
    %58 = math.exp %57 : vector<8x8xf32>
    %cst_20 = arith.constant dense<0.000000e+00> : vector<8xf32>
    %59 = vector.multi_reduction <add>, %58, %cst_20 [1] : vector<8x8xf32> to vector<8xf32>
    %60 = vector.shape_cast %59 : vector<8xf32> to vector<8x1xf32>
    %61 = tpu.reciprocal %60 {approx = true} : vector<8x1xf32> -> vector<8x1xf32>
    %62 = vector.broadcast %61 : vector<8x1xf32> to vector<8x8xf32>
    %63 = arith.mulf %58, %62 : vector<8x8xf32>
    %64 = arith.truncf %63 : vector<8x8xf32> to vector<8x8xbf16>
    %cst_21 = arith.constant dense<0.000000e+00> : vector<8x8xf32>
    %65 = tpu.matmul %64, %48, %cst_21 {dimension_numbers = #tpu.dot_dimension_numbers<[1], [0], [0], [1], [0, 0, 1, 1], [], []>} : vector<8x8xbf16>, vector<8x8xbf16>, vector<8x8xf32> -> vector<8x8xf32>
    %66 = vector.extract_strided_slice %1 {offsets = [0, 24], sizes = [8, 8], strides = [1, 1]} : vector<8x32xbf16> to vector<8x8xbf16>
    %67 = vector.extract_strided_slice %3 {offsets = [0, 24], sizes = [8, 8], strides = [1, 1]} : vector<8x64xbf16> to vector<8x8xbf16>
    %68 = vector.extract_strided_slice %3 {offsets = [0, 56], sizes = [8, 8], strides = [1, 1]} : vector<8x64xbf16> to vector<8x8xbf16>
    %cst_22 = arith.constant dense<0.000000e+00> : vector<8x8xf32>
    %69 = tpu.matmul %66, %67, %cst_22 {dimension_numbers = #tpu.dot_dimension_numbers<[1], [1], [0], [0], [0, 0, 1, 0], [], []>} : vector<8x8xbf16>, vector<8x8xbf16>, vector<8x8xf32> -> vector<8x8xf32>
    %cst_23 = arith.constant 0.353553385 : f32
    %70 = vector.broadcast %cst_23 : f32 to vector<8x8xf32>
    %71 = arith.mulf %69, %70 : vector<8x8xf32>
    %72 = vector.broadcast %5 : vector<1x8xf32> to vector<8x8xf32>
    %73 = arith.addf %71, %72 : vector<8x8xf32>
    %cst_24 = arith.constant dense<0xFF800000> : vector<8xf32>
    %74 = vector.multi_reduction <maximumf>, %73, %cst_24 [1] : vector<8x8xf32> to vector<8xf32>
    %75 = vector.shape_cast %74 : vector<8xf32> to vector<8x1xf32>
    %76 = vector.broadcast %75 : vector<8x1xf32> to vector<8x8xf32>
    %77 = arith.subf %73, %76 : vector<8x8xf32>
    %78 = math.exp %77 : vector<8x8xf32>
    %cst_25 = arith.constant dense<0.000000e+00> : vector<8xf32>
    %79 = vector.multi_reduction <add>, %78, %cst_25 [1] : vector<8x8xf32> to vector<8xf32>
    %80 = vector.shape_cast %79 : vector<8xf32> to vector<8x1xf32>
    %81 = tpu.reciprocal %80 {approx = true} : vector<8x1xf32> -> vector<8x1xf32>
    %82 = vector.broadcast %81 : vector<8x1xf32> to vector<8x8xf32>
    %83 = arith.mulf %78, %82 : vector<8x8xf32>
    %84 = arith.truncf %83 : vector<8x8xf32> to vector<8x8xbf16>
    %cst_26 = arith.constant dense<0.000000e+00> : vector<8x8xf32>
    %85 = tpu.matmul %84, %68, %cst_26 {dimension_numbers = #tpu.dot_dimension_numbers<[1], [0], [0], [1], [0, 0, 1, 1], [], []>} : vector<8x8xbf16>, vector<8x8xbf16>, vector<8x8xf32> -> vector<8x8xf32>
    %86 = tpu.concatenate %25, %45, %65, %85 in 1 : vector<8x8xf32>, vector<8x8xf32>, vector<8x8xf32>, vector<8x8xf32> -> vector<8x32xf32>
    %87 = arith.truncf %86 : vector<8x32xf32> to vector<8x32xbf16>
    %c0_27 = arith.constant 0 : index
    %c0_28 = arith.constant 0 : index
    %88 = vector.load %arg6[%c0_27, %c0_28] : memref<32x32xbf16, #tpu.memory_space<vmem>>, vector<32x32xbf16>
    %cst_29 = arith.constant dense<0.000000e+00> : vector<8x32xf32>
    %89 = tpu.matmul %87, %88, %cst_29 {dimension_numbers = #tpu.dot_dimension_numbers<[1], [0], [0], [1], [0, 0, 1, 1], [], []>} : vector<8x32xbf16>, vector<32x32xbf16>, vector<8x32xf32> -> vector<8x32xf32>
    %c0_30 = arith.constant 0 : index
    %c0_31 = arith.constant 0 : index
    %90 = vector.load %arg7[%c0_30, %c0_31] : memref<1x32xf32, #tpu.memory_space<vmem>>, vector<1x32xf32>
    %91 = vector.broadcast %90 : vector<1x32xf32> to vector<8x32xf32>
    %92 = arith.addf %89, %91 : vector<8x32xf32>
    %c0_32 = arith.constant 0 : index
    %c0_33 = arith.constant 0 : index
    %c0_34 = arith.constant 0 : index
    %93 = vector.load %arg5[%c0_32, %c0_33, %c0_34] : memref<1x8x32xbf16, #tpu.memory_space<vmem>>, vector<1x8x32xbf16>
    %94 = vector.shape_cast %93 : vector<1x8x32xbf16> to vector<8x32xbf16>
    %95 = arith.extf %94 : vector<8x32xbf16> to vector<8x32xf32>
    %96 = arith.addf %92, %95 : vector<8x32xf32>
    %c0_35 = arith.constant 0 : index
    %c0_36 = arith.constant 0 : index
    %97 = vector.load %arg8[%c0_35, %c0_36] : memref<1x32xf32, #tpu.memory_space<vmem>>, vector<1x32xf32>
    %c0_37 = arith.constant 0 : index
    %c0_38 = arith.constant 0 : index
    %98 = vector.load %arg9[%c0_37, %c0_38] : memref<1x32xf32, #tpu.memory_space<vmem>>, vector<1x32xf32>
    %cst_39 = arith.constant dense<0.000000e+00> : vector<8xf32>
    %99 = vector.multi_reduction <add>, %96, %cst_39 [1] : vector<8x32xf32> to vector<8xf32>
    %100 = vector.shape_cast %99 : vector<8xf32> to vector<8x1xf32>
    %cst_40 = arith.constant 3.200000e+01 : f32
    %101 = vector.broadcast %cst_40 : f32 to vector<8x1xf32>
    %102 = arith.divf %100, %101 : vector<8x1xf32>
    %103 = vector.broadcast %102 : vector<8x1xf32> to vector<8x32xf32>
    %104 = arith.subf %96, %103 : vector<8x32xf32>
    %105 = arith.mulf %104, %104 : vector<8x32xf32>
    %cst_41 = arith.constant dense<0.000000e+00> : vector<8xf32>
    %106 = vector.multi_reduction <add>, %105, %cst_41 [1] : vector<8x32xf32> to vector<8xf32>
    %107 = vector.shape_cast %106 : vector<8xf32> to vector<8x1xf32>
    %cst_42 = arith.constant 3.200000e+01 : f32
    %108 = vector.broadcast %cst_42 : f32 to vector<8x1xf32>
    %109 = arith.divf %107, %108 : vector<8x1xf32>
    %cst_43 = arith.constant 9.99999974E-6 : f32
    %110 = vector.broadcast %cst_43 : f32 to vector<8x1xf32>
    %111 = arith.addf %109, %110 : vector<8x1xf32>
    %112 = math.rsqrt %111 : vector<8x1xf32>
    %113 = vector.broadcast %112 : vector<8x1xf32> to vector<8x32xf32>
    %114 = arith.mulf %104, %113 : vector<8x32xf32>
    %115 = vector.broadcast %97 : vector<1x32xf32> to vector<8x32xf32>
    %116 = arith.mulf %114, %115 : vector<8x32xf32>
    %117 = vector.broadcast %98 : vector<1x32xf32> to vector<8x32xf32>
    %118 = arith.addf %116, %117 : vector<8x32xf32>
    %119 = arith.truncf %118 : vector<8x32xf32> to vector<8x32xbf16>
    %c0_44 = arith.constant 0 : index
    %c0_45 = arith.constant 0 : index
    %c0_46 = arith.constant 0 : index
    %120 = vector.load %arg10[%c0_44, %c0_45, %c0_46] : memref<1x8x32xbf16, #tpu.memory_space<vmem>>, vector<1x8x32xbf16>
    %121 = vector.shape_cast %120 : vector<1x8x32xbf16> to vector<8x32xbf16>
    %122 = vector.shape_cast %119 : vector<8x32xbf16> to vector<1x8x32xbf16>
    tpu.vector_store %arg10[%c0_44, %c0_45, %c0_46], %122 {strides = array<i32>} : memref<1x8x32xbf16, #tpu.memory_space<vmem>>, vector<1x8x32xbf16>,
    return
  }
  func.func @transform_0(%arg0: i32, %arg1: i32) -> (i32, i32, i32) {
    %c0_i32 = arith.constant 0 : i32
    %c0_i32_0 = arith.constant 0 : i32
    return %arg0, %arg1, %c0_i32 : i32, i32, i32
  }
  func.func @transform_1(%arg0: i32, %arg1: i32) -> (i32, i32, i32) {
    %c0_i32 = arith.constant 0 : i32
    %c0_i32_0 = arith.constant 0 : i32
    %c0_i32_1 = arith.constant 0 : i32
    return %arg0, %c0_i32, %c0_i32_0 : i32, i32, i32
  }
  func.func @transform_2(%arg0: i32, %arg1: i32) -> (i32, i32, i32) {
    %c0_i32 = arith.constant 0 : i32
    %c0_i32_0 = arith.constant 0 : i32
    %c0_i32_1 = arith.constant 0 : i32
    return %arg0, %c0_i32, %c0_i32_0 : i32, i32, i32
  }
  func.func @transform_3(%arg0: i32, %arg1: i32) -> (i32, i32, i32) {
    %c0_i32 = arith.constant 0 : i32
    %c0_i32_0 = arith.constant 0 : i32
    return %arg0, %arg1, %c0_i32 : i32, i32, i32
  }
  func.func @transform_4(%arg0: i32, %arg1: i32) -> (i32, i32) {
    %c0_i32 = arith.constant 0 : i32
    %c0_i32_0 = arith.constant 0 : i32
    %c0_i32_1 = arith.constant 0 : i32
    return %c0_i32, %c0_i32_0 : i32, i32
  }
  func.func @transform_5(%arg0: i32, %arg1: i32) -> (i32, i32) {
    %c0_i32 = arith.constant 0 : i32
    %c0_i32_0 = arith.constant 0 : i32
    %c0_i32_1 = arith.constant 0 : i32
    return %c0_i32, %c0_i32_0 : i32, i32
  }
  func.func @transform_6(%arg0: i32, %arg1: i32) -> (i32, i32) {
    %c0_i32 = arith.constant 0 : i32
    %c0_i32_0 = arith.constant 0 : i32
    %c0_i32_1 = arith.constant 0 : i32
    return %c0_i32, %c0_i32_0 : i32, i32
  }
  func.func @transform_7(%arg0: i32, %arg1: i32) -> (i32, i32) {
    %c0_i32 = arith.constant 0 : i32
    %c0_i32_0 = arith.constant 0 : i32
    %c0_i32_1 = arith.constant 0 : i32
    return %c0_i32, %c0_i32_0 : i32, i32
  }
  func.func @transform_8(%arg0: i32, %arg1: i32) -> (i32, i32, i32) {
    %c0_i32 = arith.constant 0 : i32
    %c0_i32_0 = arith.constant 0 : i32
    return %arg0, %arg1, %c0_i32 : i32, i32, i32
  }
}

module attributes {stable_mosaic.version = 11 : i64} {
  func.func @_ffn_adapter_ln_kernel(%arg0: i32, %arg1: memref<8x32xbf16, #tpu.memory_space<vmem>>, %arg2: memref<32x64xbf16, #tpu.memory_space<vmem>>, %arg3: memref<1x64xf32, #tpu.memory_space<vmem>>, %arg4: memref<64x32xbf16, #tpu.memory_space<vmem>>, %arg5: memref<1x32xf32, #tpu.memory_space<vmem>>, %arg6: memref<32x8xbf16, #tpu.memory_space<vmem>>, %arg7: memref<1x8xf32, #tpu.memory_space<vmem>>, %arg8: memref<8x32xbf16, #tpu.memory_space<vmem>>, %arg9: memref<1x32xf32, #tpu.memory_space<vmem>>, %arg10: memref<1x32xf32, #tpu.memory_space<vmem>>, %arg11: memref<1x32xf32, #tpu.memory_space<vmem>>, %arg12: memref<8x32xbf16, #tpu.memory_space<vmem>>) attributes {dimension_semantics = [#tpu.dimension_semantics<parallel>], iteration_bounds = array<i64: 2>, scalar_prefetch = 0 : i64, scratch_operands = 0 : i64, tpu.core_type = #tpu.core_type<tc>, window_params = [{transform_indices = @transform_0, window_bounds = array<i64: 8, 32>}, {pipeline_mode = #tpu.pipeline_mode<synchronous>, transform_indices = @transform_1, window_bounds = array<i64: 32, 64>}, {pipeline_mode = #tpu.pipeline_mode<synchronous>, transform_indices = @transform_2, window_bounds = array<i64: 1, 64>}, {pipeline_mode = #tpu.pipeline_mode<synchronous>, transform_indices = @transform_3, window_bounds = array<i64: 64, 32>}, {pipeline_mode = #tpu.pipeline_mode<synchronous>, transform_indices = @transform_4, window_bounds = array<i64: 1, 32>}, {pipeline_mode = #tpu.pipeline_mode<synchronous>, transform_indices = @transform_5, window_bounds = array<i64: 32, 8>}, {pipeline_mode = #tpu.pipeline_mode<synchronous>, transform_indices = @transform_6, window_bounds = array<i64: 1, 8>}, {pipeline_mode = #tpu.pipeline_mode<synchronous>, transform_indices = @transform_7, window_bounds = array<i64: 8, 32>}, {pipeline_mode = #tpu.pipeline_mode<synchronous>, transform_indices = @transform_8, window_bounds = array<i64: 1, 32>}, {pipeline_mode = #tpu.pipeline_mode<synchronous>, transform_indices = @transform_9, window_bounds = array<i64: 1, 32>}, {pipeline_mode = #tpu.pipeline_mode<synchronous>, transform_indices = @transform_10, window_bounds = array<i64: 1, 32>}, {transform_indices = @transform_11, window_bounds = array<i64: 8, 32>}]} {
    %c0 = arith.constant 0 : index
    %c0_0 = arith.constant 0 : index
    %0 = vector.load %arg1[%c0, %c0_0] : memref<8x32xbf16, #tpu.memory_space<vmem>>, vector<8x32xbf16>
    %c0_1 = arith.constant 0 : index
    %c0_2 = arith.constant 0 : index
    %1 = vector.load %arg2[%c0_1, %c0_2] : memref<32x64xbf16, #tpu.memory_space<vmem>>, vector<32x64xbf16>
    %cst = arith.constant dense<0.000000e+00> : vector<8x64xf32>
    %2 = tpu.matmul %0, %1, %cst {dimension_numbers = #tpu.dot_dimension_numbers<[1], [0], [0], [1], [0, 0, 1, 1], [], []>} : vector<8x32xbf16>, vector<32x64xbf16>, vector<8x64xf32> -> vector<8x64xf32>
    %c0_3 = arith.constant 0 : index
    %c0_4 = arith.constant 0 : index
    %3 = vector.load %arg3[%c0_3, %c0_4] : memref<1x64xf32, #tpu.memory_space<vmem>>, vector<1x64xf32>
    %4 = vector.broadcast %3 : vector<1x64xf32> to vector<8x64xf32>
    %5 = arith.addf %2, %4 : vector<8x64xf32>
    %6 = arith.mulf %5, %5 : vector<8x64xf32>
    %7 = arith.mulf %5, %6 : vector<8x64xf32>
    %cst_5 = arith.constant 4.471500e-02 : f32
    %8 = vector.broadcast %cst_5 : f32 to vector<8x64xf32>
    %9 = arith.mulf %8, %7 : vector<8x64xf32>
    %10 = arith.addf %5, %9 : vector<8x64xf32>
    %cst_6 = arith.constant 0.797884583 : f32
    %11 = vector.broadcast %cst_6 : f32 to vector<8x64xf32>
    %12 = arith.mulf %11, %10 : vector<8x64xf32>
    %13 = math.tanh %12 : vector<8x64xf32>
    %cst_7 = arith.constant 1.000000e+00 : f32
    %14 = vector.broadcast %cst_7 : f32 to vector<8x64xf32>
    %15 = arith.addf %14, %13 : vector<8x64xf32>
    %cst_8 = arith.constant 5.000000e-01 : f32
    %16 = vector.broadcast %cst_8 : f32 to vector<8x64xf32>
    %17 = arith.mulf %16, %15 : vector<8x64xf32>
    %18 = arith.mulf %5, %17 : vector<8x64xf32>
    %19 = arith.truncf %18 : vector<8x64xf32> to vector<8x64xbf16>
    %c0_9 = arith.constant 0 : index
    %c0_10 = arith.constant 0 : index
    %20 = vector.load %arg4[%c0_9, %c0_10] : memref<64x32xbf16, #tpu.memory_space<vmem>>, vector<64x32xbf16>
    %cst_11 = arith.constant dense<0.000000e+00> : vector<8x32xf32>
    %21 = tpu.matmul %19, %20, %cst_11 {dimension_numbers = #tpu.dot_dimension_numbers<[1], [0], [0], [1], [0, 0, 1, 1], [], []>} : vector<8x64xbf16>, vector<64x32xbf16>, vector<8x32xf32> -> vector<8x32xf32>
    %c0_12 = arith.constant 0 : index
    %c0_13 = arith.constant 0 : index
    %22 = vector.load %arg5[%c0_12, %c0_13] : memref<1x32xf32, #tpu.memory_space<vmem>>, vector<1x32xf32>
    %23 = vector.broadcast %22 : vector<1x32xf32> to vector<8x32xf32>
    %24 = arith.addf %21, %23 : vector<8x32xf32>
    %25 = arith.truncf %24 : vector<8x32xf32> to vector<8x32xbf16>
    %c0_14 = arith.constant 0 : index
    %c0_15 = arith.constant 0 : index
    %26 = vector.load %arg6[%c0_14, %c0_15] : memref<32x8xbf16, #tpu.memory_space<vmem>>, vector<32x8xbf16>
    %cst_16 = arith.constant dense<0.000000e+00> : vector<8x8xf32>
    %27 = tpu.matmul %25, %26, %cst_16 {dimension_numbers = #tpu.dot_dimension_numbers<[1], [0], [0], [1], [0, 0, 1, 1], [], []>} : vector<8x32xbf16>, vector<32x8xbf16>, vector<8x8xf32> -> vector<8x8xf32>
    %c0_17 = arith.constant 0 : index
    %c0_18 = arith.constant 0 : index
    %28 = vector.load %arg7[%c0_17, %c0_18] : memref<1x8xf32, #tpu.memory_space<vmem>>, vector<1x8xf32>
    %29 = vector.broadcast %28 : vector<1x8xf32> to vector<8x8xf32>
    %30 = arith.addf %27, %29 : vector<8x8xf32>
    %cst_19 = arith.constant 0.000000e+00 : f32
    %31 = vector.broadcast %cst_19 : f32 to vector<8x8xf32>
    %32 = arith.maximumf %30, %31 : vector<8x8xf32>
    %33 = arith.truncf %32 : vector<8x8xf32> to vector<8x8xbf16>
    %c0_20 = arith.constant 0 : index
    %c0_21 = arith.constant 0 : index
    %34 = vector.load %arg8[%c0_20, %c0_21] : memref<8x32xbf16, #tpu.memory_space<vmem>>, vector<8x32xbf16>
    %cst_22 = arith.constant dense<0.000000e+00> : vector<8x32xf32>
    %35 = tpu.matmul %33, %34, %cst_22 {dimension_numbers = #tpu.dot_dimension_numbers<[1], [0], [0], [1], [0, 0, 1, 1], [], []>} : vector<8x8xbf16>, vector<8x32xbf16>, vector<8x32xf32> -> vector<8x32xf32>
    %c0_23 = arith.constant 0 : index
    %c0_24 = arith.constant 0 : index
    %36 = vector.load %arg9[%c0_23, %c0_24] : memref<1x32xf32, #tpu.memory_space<vmem>>, vector<1x32xf32>
    %37 = vector.broadcast %36 : vector<1x32xf32> to vector<8x32xf32>
    %38 = arith.addf %35, %37 : vector<8x32xf32>
    %39 = arith.addf %24, %38 : vector<8x32xf32>
    %40 = arith.extf %0 : vector<8x32xbf16> to vector<8x32xf32>
    %41 = arith.addf %39, %40 : vector<8x32xf32>
    %c0_25 = arith.constant 0 : index
    %c0_26 = arith.constant 0 : index
    %42 = vector.load %arg10[%c0_25, %c0_26] : memref<1x32xf32, #tpu.memory_space<vmem>>, vector<1x32xf32>
    %c0_27 = arith.constant 0 : index
    %c0_28 = arith.constant 0 : index
    %43 = vector.load %arg11[%c0_27, %c0_28] : memref<1x32xf32, #tpu.memory_space<vmem>>, vector<1x32xf32>
    %cst_29 = arith.constant dense<0.000000e+00> : vector<8xf32>
    %44 = vector.multi_reduction <add>, %41, %cst_29 [1] : vector<8x32xf32> to vector<8xf32>
    %45 = vector.shape_cast %44 : vector<8xf32> to vector<8x1xf32>
    %cst_30 = arith.constant 3.200000e+01 : f32
    %46 = vector.broadcast %cst_30 : f32 to vector<8x1xf32>
    %47 = arith.divf %45, %46 : vector<8x1xf32>
    %48 = vector.broadcast %47 : vector<8x1xf32> to vector<8x32xf32>
    %49 = arith.subf %41, %48 : vector<8x32xf32>
    %50 = arith.mulf %49, %49 : vector<8x32xf32>
    %cst_31 = arith.constant dense<0.000000e+00> : vector<8xf32>
    %51 = vector.multi_reduction <add>, %50, %cst_31 [1] : vector<8x32xf32> to vector<8xf32>
    %52 = vector.shape_cast %51 : vector<8xf32> to vector<8x1xf32>
    %cst_32 = arith.constant 3.200000e+01 : f32
    %53 = vector.broadcast %cst_32 : f32 to vector<8x1xf32>
    %54 = arith.divf %52, %53 : vector<8x1xf32>
    %cst_33 = arith.constant 9.99999974E-6 : f32
    %55 = vector.broadcast %cst_33 : f32 to vector<8x1xf32>
    %56 = arith.addf %54, %55 : vector<8x1xf32>
    %57 = math.rsqrt %56 : vector<8x1xf32>
    %58 = vector.broadcast %57 : vector<8x1xf32> to vector<8x32xf32>
    %59 = arith.mulf %49, %58 : vector<8x32xf32>
    %60 = vector.broadcast %42 : vector<1x32xf32> to vector<8x32xf32>
    %61 = arith.mulf %59, %60 : vector<8x32xf32>
    %62 = vector.broadcast %43 : vector<1x32xf32> to vector<8x32xf32>
    %63 = arith.addf %61, %62 : vector<8x32xf32>
    %64 = arith.truncf %63 : vector<8x32xf32> to vector<8x32xbf16>
    %c0_34 = arith.constant 0 : index
    %c0_35 = arith.constant 0 : index
    %65 = vector.load %arg12[%c0_34, %c0_35] : memref<8x32xbf16, #tpu.memory_space<vmem>>, vector<8x32xbf16>
    tpu.vector_store %arg12[%c0_34, %c0_35], %64 {strides = array<i32>} : memref<8x32xbf16, #tpu.memory_space<vmem>>, vector<8x32xbf16>,
    return
  }
  func.func @transform_0(%arg0: i32) -> (i32, i32) {
    %c0_i32 = arith.constant 0 : i32
    %c0_i32_0 = arith.constant 0 : i32
    return %arg0, %c0_i32 : i32, i32
  }
  func.func @transform_1(%arg0: i32) -> (i32, i32) {
    %c0_i32 = arith.constant 0 : i32
    %c0_i32_0 = arith.constant 0 : i32
    %c0_i32_1 = arith.constant 0 : i32
    return %c0_i32, %c0_i32_0 : i32, i32
  }
  func.func @transform_2(%arg0: i32) -> (i32, i32) {
    %c0_i32 = arith.constant 0 : i32
    %c0_i32_0 = arith.constant 0 : i32
    %c0_i32_1 = arith.constant 0 : i32
    return %c0_i32, %c0_i32_0 : i32, i32
  }
  func.func @transform_3(%arg0: i32) -> (i32, i32) {
    %c0_i32 = arith.constant 0 : i32
    %c0_i32_0 = arith.constant 0 : i32
    %c0_i32_1 = arith.constant 0 : i32
    return %c0_i32, %c0_i32_0 : i32, i32
  }
  func.func @transform_4(%arg0: i32) -> (i32, i32) {
    %c0_i32 = arith.constant 0 : i32
    %c0_i32_0 = arith.constant 0 : i32
    %c0_i32_1 = arith.constant 0 : i32
    return %c0_i32, %c0_i32_0 : i32, i32
  }
  func.func @transform_5(%arg0: i32) -> (i32, i32) {
    %c0_i32 = arith.constant 0 : i32
    %c0_i32_0 = arith.constant 0 : i32
    %c0_i32_1 = arith.constant 0 : i32
    return %c0_i32, %c0_i32_0 : i32, i32
  }
  func.func @transform_6(%arg0: i32) -> (i32, i32) {
    %c0_i32 = arith.constant 0 : i32
    %c0_i32_0 = arith.constant 0 : i32
    %c0_i32_1 = arith.constant 0 : i32
    return %c0_i32, %c0_i32_0 : i32, i32
  }
  func.func @transform_7(%arg0: i32) -> (i32, i32) {
    %c0_i32 = arith.constant 0 : i32
    %c0_i32_0 = arith.constant 0 : i32
    %c0_i32_1 = arith.constant 0 : i32
    return %c0_i32, %c0_i32_0 : i32, i32
  }
  func.func @transform_8(%arg0: i32) -> (i32, i32) {
    %c0_i32 = arith.constant 0 : i32
    %c0_i32_0 = arith.constant 0 : i32
    %c0_i32_1 = arith.constant 0 : i32
    return %c0_i32, %c0_i32_0 : i32, i32
  }
  func.func @transform_9(%arg0: i32) -> (i32, i32) {
    %c0_i32 = arith.constant 0 : i32
    %c0_i32_0 = arith.constant 0 : i32
    %c0_i32_1 = arith.constant 0 : i32
    return %c0_i32, %c0_i32_0 : i32, i32
  }
  func.func @transform_10(%arg0: i32) -> (i32, i32) {
    %c0_i32 = arith.constant 0 : i32
    %c0_i32_0 = arith.constant 0 : i32
    %c0_i32_1 = arith.constant 0 : i32
    return %c0_i32, %c0_i32_0 : i32, i32
  }
  func.func @transform_11(%arg0: i32) -> (i32, i32) {
    %c0_i32 = arith.constant 0 : i32
    %c0_i32_0 = arith.constant 0 : i32
    return %arg0, %c0_i32 : i32, i32
  }
}

module attributes {stable_mosaic.version = 11 : i64} {
  func.func @_cls_head_kernel(%arg0: i32, %arg1: memref<2x32xf32, #tpu.memory_space<vmem>>, %arg2: memref<32x32xbf16, #tpu.memory_space<vmem>>, %arg3: memref<1x32xf32, #tpu.memory_space<vmem>>, %arg4: memref<32x128xbf16, #tpu.memory_space<vmem>>, %arg5: memref<1x128xf32, #tpu.memory_space<vmem>>, %arg6: memref<2x128xf32, #tpu.memory_space<vmem>>) attributes {dimension_semantics = [#tpu.dimension_semantics<arbitrary>], iteration_bounds = array<i64: 1>, scalar_prefetch = 0 : i64, scratch_operands = 0 : i64, tpu.core_type = #tpu.core_type<tc>, window_params = [{pipeline_mode = #tpu.pipeline_mode<synchronous>, transform_indices = @transform_0, window_bounds = array<i64: 2, 32>}, {pipeline_mode = #tpu.pipeline_mode<synchronous>, transform_indices = @transform_1, window_bounds = array<i64: 32, 32>}, {pipeline_mode = #tpu.pipeline_mode<synchronous>, transform_indices = @transform_2, window_bounds = array<i64: 1, 32>}, {pipeline_mode = #tpu.pipeline_mode<synchronous>, transform_indices = @transform_3, window_bounds = array<i64: 32, 128>}, {pipeline_mode = #tpu.pipeline_mode<synchronous>, transform_indices = @transform_4, window_bounds = array<i64: 1, 128>}, {pipeline_mode = #tpu.pipeline_mode<synchronous>, transform_indices = @transform_5, window_bounds = array<i64: 2, 128>}]} {
    %c0 = arith.constant 0 : index
    %c0_0 = arith.constant 0 : index
    %0 = vector.load %arg1[%c0, %c0_0] : memref<2x32xf32, #tpu.memory_space<vmem>>, vector<2x32xf32>
    %1 = arith.truncf %0 : vector<2x32xf32> to vector<2x32xbf16>
    %c0_1 = arith.constant 0 : index
    %c0_2 = arith.constant 0 : index
    %2 = vector.load %arg2[%c0_1, %c0_2] : memref<32x32xbf16, #tpu.memory_space<vmem>>, vector<32x32xbf16>
    %cst = arith.constant dense<0.000000e+00> : vector<2x32xf32>
    %3 = tpu.matmul %1, %2, %cst {dimension_numbers = #tpu.dot_dimension_numbers<[1], [0], [0], [1], [0, 0, 1, 1], [], []>} : vector<2x32xbf16>, vector<32x32xbf16>, vector<2x32xf32> -> vector<2x32xf32>
    %c0_3 = arith.constant 0 : index
    %c0_4 = arith.constant 0 : index
    %4 = vector.load %arg3[%c0_3, %c0_4] : memref<1x32xf32, #tpu.memory_space<vmem>>, vector<1x32xf32>
    %5 = vector.broadcast %4 : vector<1x32xf32> to vector<2x32xf32>
    %6 = arith.addf %3, %5 : vector<2x32xf32>
    %7 = math.tanh %6 : vector<2x32xf32>
    %8 = arith.truncf %7 : vector<2x32xf32> to vector<2x32xbf16>
    %c0_5 = arith.constant 0 : index
    %c0_6 = arith.constant 0 : index
    %9 = vector.load %arg4[%c0_5, %c0_6] : memref<32x128xbf16, #tpu.memory_space<vmem>>, vector<32x128xbf16>
    %cst_7 = arith.constant dense<0.000000e+00> : vector<2x128xf32>
    %10 = tpu.matmul %8, %9, %cst_7 {dimension_numbers = #tpu.dot_dimension_numbers<[1], [0], [0], [1], [0, 0, 1, 1], [], []>} : vector<2x32xbf16>, vector<32x128xbf16>, vector<2x128xf32> -> vector<2x128xf32>
    %c0_8 = arith.constant 0 : index
    %c0_9 = arith.constant 0 : index
    %11 = vector.load %arg5[%c0_8, %c0_9] : memref<1x128xf32, #tpu.memory_space<vmem>>, vector<1x128xf32>
    %12 = vector.broadcast %11 : vector<1x128xf32> to vector<2x128xf32>
    %13 = arith.addf %10, %12 : vector<2x128xf32>
    %c0_10 = arith.constant 0 : index
    %c0_11 = arith.constant 0 : index
    %14 = vector.load %arg6[%c0_10, %c0_11] : memref<2x128xf32, #tpu.memory_space<vmem>>, vector<2x128xf32>
    tpu.vector_store %arg6[%c0_10, %c0_11], %13 {strides = array<i32>} : memref<2x128xf32, #tpu.memory_space<vmem>>, vector<2x128xf32>,
    return
  }
  func.func @transform_0(%arg0: i32) -> (i32, i32) {
    %c0_i32 = arith.constant 0 : i32
    %c0_i32_0 = arith.constant 0 : i32
    %c0_i32_1 = arith.constant 0 : i32
    return %c0_i32, %c0_i32_0 : i32, i32
  }
  func.func @transform_1(%arg0: i32) -> (i32, i32) {
    %c0_i32 = arith.constant 0 : i32
    %c0_i32_0 = arith.constant 0 : i32
    %c0_i32_1 = arith.constant 0 : i32
    return %c0_i32, %c0_i32_0 : i32, i32
  }
  func.func @transform_2(%arg0: i32) -> (i32, i32) {
    %c0_i32 = arith.constant 0 : i32
    %c0_i32_0 = arith.constant 0 : i32
    %c0_i32_1 = arith.constant 0 : i32
    return %c0_i32, %c0_i32_0 : i32, i32
  }
  func.func @transform_3(%arg0: i32) -> (i32, i32) {
    %c0_i32 = arith.constant 0 : i32
    %c0_i32_0 = arith.constant 0 : i32
    %c0_i32_1 = arith.constant 0 : i32
    return %c0_i32, %c0_i32_0 : i32, i32
  }
  func.func @transform_4(%arg0: i32) -> (i32, i32) {
    %c0_i32 = arith.constant 0 : i32
    %c0_i32_0 = arith.constant 0 : i32
    %c0_i32_1 = arith.constant 0 : i32
    return %c0_i32, %c0_i32_0 : i32, i32
  }
  func.func @transform_5(%arg0: i32) -> (i32, i32) {
    %c0_i32 = arith.constant 0 : i32
    %c0_i32_0 = arith.constant 0 : i32
    %c0_i32_1 = arith.constant 0 : i32
    return %c0_i32, %c0_i32_0 : i32, i32
  }
}

</mosaic_0001>

<bundles_post_ra>
// kernel: tpu_custom_call.1
= control target key start
LH: loop header
LB: loop body
LE: loop exit
PB: predicated region body
PF: predicated region fallthrough
CT: control target
= control target key end

     0   :  { %7 = vsyncpa [#allocation3], 0  ;;  %s633_s0 = inlined_call_operand.hbm [shape: f32[16,128], index: 0, kind: input, shape index: {}]   ;;  %s634_s1 = inlined_call_operand.hbm [shape: f32[8,128], index: 1, kind: input, shape index: {}]   ;;  %s635_s2 = inlined_call_operand.hbm [shape: f32[16,128], index: 2, kind: output, shape index: {}]  }
   0x1   :  { %9 = vsyncpa [#allocation3 + $0x1], 0 }
   0x2   :  { %10 = vsyncpa [#allocation6], 0 }
   0x3   :  { %11 = vsyncpa [#allocation4], 0 }
   0x4   :  { %13 = vsyncpa [#allocation4 + $0x1], 0  ;;  %s495_s9 = smov 0   ;;  %s497_s10 = smov 0  }
   0x5   :  { %s499_s11 = smov 0   ;;  %s501_s12 = smov 0  }
   0x6 LB: > { %s516_s13 = sadd.s32 4294967295, %s477_s12   ;;  %s276_s14 = sadd.s32 4294967294, %s477_s12   ;;  %s477_s12 = sphi %s501_s12, %s645_s12   ;;  %s473_s11 = sphi %s499_s11, %s644_s11   ;;  %s469_s10 = sphi %s497_s10, %s643_s10   ;;  %s465_s9 = sphi %s495_s9, %s642_s9  }
   0x7   : > { %p39_p0 = scmp.ne.s32.totalorder %s469_s10, %s465_s9  ;;  %p40_p1 = scmp.eq.s32.totalorder %s516_s13, 0 }
   0x8   : > { %p84_p2 = scmp.eq.s32.totalorder %s516_s13, 1  ;;  %p90_p3 = scmp.eq.s32.totalorder %s276_s14, 1 }
   0x9   : > { %p525_p4 = por %p40_p1, %p39_p0  ;;  %p277_p5 = scmp.ge.s32.totalorder %s477_s12, 1 }
   0xa   : > { %p530_p6 = por %p90_p3, %p39_p0  ;;  %p97_p7 = scmp.lt.s32.totalorder %s477_s12, 3 }
   0xb   : > { %s109_s19 = sshll.u32 %s634_s1, 4  ;;  %s479_s21 = smov [#allocation5]   ;;  %s110_s19 = int_to_ptr.hbm [resolvable:$true] %s109_s19 }
   0xc   : > { %p538_p8 = pnand %p277_p5, %p97_p7  ;;  %s111_s22 = sshll.u32 %s479_s21, 4  ;;  %s112_s22 = int_to_ptr.vmem [resolvable:$true] %s111_s22 }
   0xd   : > { %s548_s23 = sadd.s32 1, %s477_s12   ;;  %s26_s24 = sadd.s32 1, %s473_s11 }
   0xe   : > { %p298_p10 = pneg %p538_p8  ;;  %s23_s25 = ssub.s32 %s477_s12, %s548_s23 }
   0xf   : > { %p24_p12 = scmp.eq.s32.totalorder %s23_s25, 0  ;;  %p33_p13 = scmp.ne.s32.totalorder %s473_s11, %s469_s10 }
  0x10   : > { %p299_p11 = pnand %p298_p10, %p40_p1  ;;  %p34_p0 = scmp.eq.s32.totalorder %s477_s12, 0 }
  0x11   : > { %s557_s26 = scalar_select %p24_p12, %s473_s11, %s26_s24  }
  0x12   : > { %301 = dma.hbm_to_vmem [thread:$0]  (!%p299_p11), %s110_s19, 128, %s112_s22, [#allocation6]  }
  0x13   : > { %p561_p3 = por %p84_p2, %p33_p13  ;;  %p311_p5 = scmp.lt.s32.totalorder %s477_s12, 2 }
  0x14   : > { %s122_s28 = sand.u32 1, %s473_s11   ;;  %s281_s29 = sshll.u32 %s477_s12, 3 }
  0x15   : > { %p35_p7 = por %p34_p0, %p33_p13  ;;  %s280_s30 = sshll.u32 %s122_s28, 3 }
  0x16   : > { %s130_s5 = scalar_lea.hbm %s633_s0, %s281_s29  ;;  %s126_s7 = scalar_lea.vmem [#allocation2], %s280_s30 }
  0x17   : > { %s132_s6 = sshll.u32 %s130_s5, 4  ;;  %s134_s8 = sshll.u32 %s126_s7, 4  ;;  %s133_s6 = int_to_ptr.hbm [resolvable:$true] %s132_s6  ;;  %s135_s8 = int_to_ptr.vmem [resolvable:$true] %s134_s8 }
  0x18   : > { %p571_p10 = pnand %p311_p5, %p35_p7  ;;  %s123_s17 = scalar_lea.sflag [#allocation3], %s122_s28 }
  0x19   : > { %s377_s18 = sshra.s32 %s133_s6, 4  ;;  %s384_s24 = scalar_lea.hbm %s633_s0, 16  ;;  %s378_s18 = int_to_ptr.hbm [resolvable:$true] %s377_s18 }
  0x1a   : > { %s379_s19 = scalar_lea.hbm %s378_s18, 8  ;;  %p381_p11 = pneg %p571_p10 }
  0x1b   : > { %p380_p2 = scmp.ne.s32.totalorder %s378_s18, %s379_s19  ;;  %p385_p0 = scmp.lt.s32.totalorder %s378_s18, %s633_s0 }
  0x1c   : > { %p386_p5 = scmp.lt.s32.totalorder %s384_s24, %s379_s19 }
  0x1d   : > { %p382_p12 = pnand %p381_p11, %p380_p2 }
  0x1e   : > { %p387_p7 = por %p386_p5, %p385_p0 }
  0x1f   : > { %p383_p13 = pneg %p382_p12 }
  0x21   : > { %p388_p9 = pnand %p387_p7, %p383_p13 }
  0x23   : > { %391 = shalt.err (!%p388_p9)
}
  0x24   : > { %305 = dma.hbm_to_vmem [thread:$0]  (!%p571_p10), %s133_s6, 128, %s135_s8, %s123_s17  }
  0x25   : > { %143 = sbr.rel (%p538_p8) target bundleno = 60 (0x3c), region = 28  ;;  %s588_s28 = sand.u32 (!%p538_p8), 1, %s469_s10  }
  0x26   : > { %s283_s30 = sshll.u32 (!%p538_p8), %s588_s28, 3  ;;  %s146_s3 = scalar_lea.sflag (!%p538_p8), [#allocation3], %s588_s28 }
  0x27   : > { %s149_s4 = scalar_lea.vmem (!%p538_p8), [#allocation2], %s283_s30 }
  0x2a   : > { %452 = dma.done.wait (%p525_p4), %s146_s3, 128  }
  0x2b   : > { %454 = vsyncadd (%p525_p4), %s146_s3, 4294967168 }
  0x2c   : > { %456 = dma.done.wait (%p40_p1), [#allocation6], 128  }
  0x2d   : > { %458 = vsyncadd (%p40_p1), [#allocation6], 4294967168  ;;  %s287_s20 = sshll.u32 %s516_s13, 3  ;;  %s175_s8 = scalar_lea.vmem [#allocation7], %s283_s30  ;;  %v176_v0 = vld [vmem:[%s149_s4] sm:$0xff]  ;;  %v177_v1 = vld [vmem:[#allocation5] sm:$0xff] }
  0x2e   : > { %s191_s7 = scalar_lea.hbm %s635_s2, %s287_s20  ;;  %s193_s14 = sshll.u32 %s175_s8, 4  ;;  %v178_v2 = vadd.f32 %v177_v1, %v176_v0  ;;  %s194_s14 = int_to_ptr.vmem [resolvable:$true] %s193_s14 }
  0x2f   : > { %s195_s17 = sshll.u32 %s191_s7, 4  ;;  %s181_s15 = scalar_lea.sflag [#allocation4], %s588_s28  ;;  %s196_s17 = int_to_ptr.hbm [resolvable:$true] %s195_s17 }
  0x30   : > { %179 = vst [vmem:[%s175_s8] sm:$0xff] %v178_v2  ;;  %s421_s18 = sshra.s32 %s196_s17, 4  ;;  %s427_s22 = scalar_lea.hbm %s635_s2, 16  ;;  %s422_s18 = int_to_ptr.hbm [resolvable:$true] %s421_s18 }
  0x31   : > { %s423_s19 = scalar_lea.hbm %s422_s18, 8  ;;  %p428_p9 = scmp.lt.s32.totalorder %s422_s18, %s635_s2 }
  0x32   : > { %p424_p1 = scmp.ne.s32.totalorder %s422_s18, %s423_s19  ;;  %p429_p10 = scmp.lt.s32.totalorder %s427_s22, %s423_s19 }
  0x34   : > { %p425_p4 = pnand %p424_p1, %p561_p3  ;;  %p430_p2 = por %p429_p10, %p428_p9 }
  0x36   : > { %p426_p8 = pneg %p425_p4 }
  0x38   : > { %p431_p11 = pnand %p430_p2, %p426_p8 }
  0x3a   : > { %434 = shalt.err (!%p431_p11)
}
  0x3b   : > { %296 = dma.vmem_to_hbm [thread:$0]  (%p561_p3), %s194_s14, 128, %s196_s17, %s181_s15  }
  0x3c PF: > { %s207_s29 = sand.u32 1, %s465_s9   ;;  %p641_p12 = scmp.ge.s32.totalorder %s477_s12, 2 }
  0x3d   : > { %s208_s28 = scalar_lea.sflag [#allocation4], %s207_s29 }
  0x3e   : > { %p307_p13 = pnand %p641_p12, %p530_p6 }
  0x40   : > { %p308_p0 = pneg %p307_p13 }
  0x42   : > { %460 = dma.done.wait (%p308_p0), %s208_s28, 128  }
  0x43   : > { %462 = vsyncadd (%p308_p0), %s208_s28, 4294967168  ;;  %p16_p5 = scmp.ge.s32.totalorder %s548_s23, 4   ;;  %s642_s9 = smov %s469_s10 }
  0x44   : > { %s643_s10 = smov %s473_s11  ;;  %s644_s11 = smov %s557_s26 }
  0x45   : > { %s645_s12 = smov %s548_s23  ;;  %18 = sbr.rel (!%p16_p5) target bundleno = 6 (0x6), region = 77 }
  0x4a   :  { %214 = vsyncpa [#allocation3], 1 }
  0x4b   :  { %216 = vsyncpa [#allocation3 + $0x1], 1 }
  0x4c   :  { %217 = vsyncpa [#allocation6], 1 }
  0x4d   :  { %218 = vsyncpa [#allocation4], 1 }
  0x4e   :  { %220 = vsyncpa [#allocation4 + $0x1], 1 }

// kernel: text_bert_adapter_forward.9
= control target key start
LH: loop header
LB: loop body
LE: loop exit
PB: predicated region body
PF: predicated region fallthrough
CT: control target
= control target key end

     0   :  { %s401_s15 = smov 0   ;;  %s430_s0 = inlined_call_operand.vmem [shape: bf16[16,32], index: 0, kind: input, shape index: {}]   ;;  %s431_s1 = inlined_call_operand.vmem [shape: bf16[32,96], index: 1, kind: input, shape index: {}]   ;;  %s432_s2 = inlined_call_operand.vmem [shape: f32[1,96], index: 2, kind: input, shape index: {}]   ;;  %s433_s3 = inlined_call_operand.vmem [shape: bf16[16,32], index: 3, kind: output, shape index: {0}]   ;;  %s434_s4 = inlined_call_operand.vmem [shape: bf16[16,64], index: 4, kind: output, shape index: {1}]  }
   0x1 LB: > { %s336_s16 = sadd.s32 4294967295, %s373_s15   ;;  %p340_p0 = scmp.ge.s32.totalorder %s373_s15, 1  ;;  %s373_s15 = sphi %s401_s15, %s15_s15  }
   0x2   : > { %p164_p1 = scmp.lt.s32.totalorder %s373_s15, 3 }
   0x4   : > { %p165_p2 = pnand %p340_p0, %p164_p1 }
   0x5   : > { %p192_p3 = scmp.lt.s32.totalorder (!%p165_p2), %s336_s16, 1  ;;  %s375_s30 = smov (!%p165_p2), 96  }
   0x6   : > { %168 = sbr.rel (%p165_p2) target bundleno = 265 (0x109), region = 32 }
   0xb   : > { %v356_v0 = vld [vmem:[%s431_s1 + $0x8] sm:$0xff]  ;;  %v355_v1 = vld [vmem:[%s431_s1] sm:$0xff]  ;;  %s436_s16 = smov (!%p192_p3, %s336_s16), 1  ;;  %vm226_vm0 = vcmask 261120   ;;  %vm244_vm1 = vcmask 257024   ;;  %vm250_vm2 = vcmask 519168  }
   0xc   : > { %236 = vmatpush.bf16.msra.mxu0 %v356_v0  ;;  %s341_s21 = sshll.u32 %s436_s16, 2  ;;  %v366_v3 = vld [vmem:[%s432_s2] ss:$0 sm:$0xff] }
   0xd   : > { %s195_s24 = scalar_lea.vmem %s430_s0, %s341_s21  ;;  %s199_s29 = scalar_lea.vmem %s433_s3, %s341_s21 }
   0xe   : > { %v205_v2 = vld [vmem:[%s195_s24] sm:$0xf]  ;;  %s203_s7 = scalar_lea.vmem %s434_s4, %s341_s21 }
  0x10   : > { %237 = vmatpush.bf16.msra.mxu0 %v355_v1 }
  0x13   : > { %352 = vmatmul.msk.bf16.vlgmr.msra.gmra.mxu0 %vm226_vm0, %v205_v2 }
  0x90   : > { %v239_v4 = vpop.f32.mrf.mxu0 }
  0x91   : > { %v240_v5 = vadd.f32 %v366_v3, %v239_v4 }
  0x93   : > { %v243_v6 = vpack.c.bf16 %v240_v5, %v240_v5 }
  0x95   : > { %245 = vst.msk [vmem:[%s199_s29] sm:$0xf] %vm244_vm1, %v243_v6  ;;  %247 = vrot.lane.b32.xlu0 %v243_v6, %s375_s30 }
  0x98   : > { %v241_v7 = vpop.f32.mrf.mxu0 }
 0x107   : > { %v248_v8 = vpop.permute.xlu0 %247 }
 0x108   : > { %251 = vst.msk [vmem:[%s203_s7] sm:$0xf] %vm250_vm2, %v248_v8 }
 0x109 PF: > { %s15_s15 = sadd.s32 1, %s373_s15  }
 0x10a   : > { %p12_p4 = scmp.ge.s32.totalorder %s15_s15, 4  }
 0x10c   :  { %14 = sbr.rel (!%p12_p4) target bundleno = 1 (0x1), region = 74 }

// kernel: text_bert_adapter_forward.8
= control target key start
LH: loop header
LB: loop body
LE: loop exit
PB: predicated region body
PF: predicated region fallthrough
CT: control target
= control target key end

     0   :  { %s316_s12 = smov 0   ;;  %s345_s0 = inlined_call_operand.vmem [shape: f32[16,32], index: 0, kind: input, shape index: {}]   ;;  %s346_s1 = inlined_call_operand.vmem [shape: f32[1,32], index: 1, kind: input, shape index: {}]   ;;  %s347_s2 = inlined_call_operand.vmem [shape: f32[1,32], index: 2, kind: input, shape index: {}]   ;;  %s348_s3 = inlined_call_operand.vmem [shape: bf16[16,32], index: 3, kind: output, shape index: {}]  }
   0x1 LB: > { %s263_s13 = sadd.s32 4294967295, %s293_s12   ;;  %p267_p0 = scmp.ge.s32.totalorder %s293_s12, 1  ;;  %s293_s12 = sphi %s316_s12, %s13_s12  }
   0x2   : > { %p136_p1 = scmp.lt.s32.totalorder %s293_s12, 3 }
   0x4   : > { %p137_p2 = pnand %p267_p0, %p136_p1 }
   0x5   : > { %p158_p3 = scmp.lt.s32.totalorder (!%p137_p2), %s263_s13, 1 }
   0x6   : > { %140 = sbr.rel (%p137_p2) target bundleno = 286 (0x11e), region = 32 }
   0xb   : > { %s350_s13 = smov (!%p158_p3, %s263_s13), 1  ;;  %vm169_vm0 = vcmask 261120   ;;  %v295_v2 = vmov 32.0   ;;  %v281_v23 = vld [vmem:[%s346_s1] ss:$0 sm:$0xff]  ;;  %vm208_vm5 = vcmask 257024  }
   0xc   : > { %s268_s14 = sshll.u32 %s350_s13, 3  ;;  %283 = vrcp.f32 %v295_v2  ;;  %v282_v25 = vld [vmem:[%s347_s2] ss:$0 sm:$0xff]  ;;  %s269_s22 = sshll.u32 %s350_s13, 2 }
   0xd   : > { %s161_s17 = scalar_lea.vmem %s345_s0, %s268_s14  ;;  %s165_s25 = scalar_lea.vmem %s348_s3, %s269_s22 }
   0xe   : > { %v166_v0 = vld [vmem:[%s161_s17] sm:$0xff] }
   0xf   : > { %v170_v1 = vsel %vm169_vm0, %v166_v0, 0.0 }
  0x10   : > { %171 = vadd.xlane.f32.xlu0 %v170_v1 }
  0x12   : > { %v284_v3 = vpop.eup %283 }
  0x13   : > { %v174_v4 = vmul.f32 32.0, %v284_v3  ;;  %vm178_vm1 = vweird.f32 %v284_v3 }
  0x15   : > { %v175_v5 = vsub.f32 1.0, %v174_v4 }
  0x17   : > { %v176_v6 = vmul.f32 %v284_v3, %v175_v5 }
  0x19   : > { %v177_v7 = vadd.f32 %v284_v3, %v176_v6 }
  0x1b   : > { %v179_v8 = vsel %vm178_vm1, %v284_v3, %v177_v7 }
  0x83   : > { %v172_v9 = vpop.xlane.xlu0 %171 }
  0x84   : > { %v180_v10 = vmul.f32 %v179_v8, %v172_v9 }
  0x86   : > { %v181_v11 = vsub.f32 %v166_v0, %v180_v10 }
  0x88   : > { %v182_v12 = vmul.f32 %v181_v11, %v181_v11 }
  0x8a   : > { %v183_v13 = vsel %vm169_vm0, %v182_v12, 0.0 }
  0x8b   : > { %184 = vadd.xlane.f32.xlu0 %v183_v13 }
  0xfe   : > { %v185_v14 = vpop.xlane.xlu0 %184 }
  0xff   : > { %v186_v15 = vmul.f32 %v185_v14, %v179_v8 }
 0x101   : > { %v187_v16 = vadd.f32 1e-05, %v186_v15 }
 0x103   : > { %285 = vrsqrt.f32 %v187_v16  ;;  %vm194_vm3 = vweird.f32 %v187_v16 }
 0x109   : > { %v286_v17 = vpop.eup %285 }
 0x10a   : > { %v189_v18 = vmul.f32 %v286_v17, %v187_v16  ;;  %vm195_vm2 = vweird.f32 %v286_v17 }
 0x10b   : > { %vm196_vm4 = vmor %vm194_vm3, %vm195_vm2 }
 0x10c   : > { %v190_v19 = vmul.f32 %v286_v17, %v189_v18 }
 0x10e   : > { %v191_v20 = vmul.f32 0.5, %v190_v19 }
 0x110   : > { %v192_v21 = vsub.f32 1.5, %v191_v20 }
 0x112   : > { %v193_v22 = vmul.f32 %v286_v17, %v192_v21 }
 0x114   : > { %v197_v24 = vsel %vm196_vm4, %v286_v17, %v193_v22 }
 0x115   : > { %v198_v26 = vmul.f32 %v197_v24, %v181_v11 }
 0x117   : > { %v202_v27 = vmul.f32 %v281_v23, %v198_v26 }
 0x119   : > { %v206_v28 = vadd.f32 %v282_v25, %v202_v27 }
 0x11b   : > { %v207_v29 = vpack.c.bf16 %v206_v28, %v206_v28 }
 0x11d   : > { %209 = vst.msk [vmem:[%s165_s25] sm:$0xf] %vm208_vm5, %v207_v29 }
 0x11e PF: > { %s13_s12 = sadd.s32 1, %s293_s12  }
 0x11f   : > { %p10_p4 = scmp.ge.s32.totalorder %s13_s12, 4  }
 0x121   :  { %12 = sbr.rel (!%p10_p4) target bundleno = 1 (0x1), region = 62 }

// kernel: text_bert_adapter_forward.10
= control target key start
LH: loop header
LB: loop body
LE: loop exit
PB: predicated region body
PF: predicated region fallthrough
CT: control target
= control target key end

     0   :  { %s1013_s27 = smov 0   ;;  %s1015_s28 = smov 0   ;;  %s1116_s0 = inlined_call_operand.vmem [shape: bf16[2,8,32], index: 0, kind: input, shape index: {}]   ;;  %s1117_s1 = inlined_call_operand.vmem [shape: bf16[2,8,64], index: 1, kind: input, shape index: {}]   ;;  %s1118_s2 = inlined_call_operand.vmem [shape: f32[2,1,8], index: 2, kind: input, shape index: {}]   ;;  %s1119_s3 = inlined_call_operand.vmem [shape: bf16[2,8,32], index: 3, kind: input, shape index: {}]   ;;  %s1120_s4 = inlined_call_operand.vmem [shape: bf16[32,32], index: 4, kind: input, shape index: {}]   ;;  %s1121_s5 = inlined_call_operand.vmem [shape: f32[1,32], index: 5, kind: input, shape index: {}]   ;;  %s1122_s6 = inlined_call_operand.vmem [shape: f32[1,32], index: 6, kind: input, shape index: {}]   ;;  %s1123_s7 = inlined_call_operand.vmem [shape: f32[1,32], index: 7, kind: input, shape index: {}]   ;;  %s1124_s8 = inlined_call_operand.vmem [shape: bf16[2,8,32], index: 8, kind: output, shape index: {}]  }
   0x1   :  { %s1017_s29 = smov 0  }
   0x2 LB: > { %s30_s30 = sadd.s32 1, %s951_s28  ;;  %p848_p0 = scmp.ge.s32.totalorder %s955_s29, 1  ;;  %s955_s29 = sphi %s1017_s29, %s18_s29   ;;  %s951_s28 = sphi %s1015_s28, %s1126_s28   ;;  %s947_s27 = sphi %s1013_s27, %s1125_s27  }
   0x3   : > { %p32_p1 = scmp.ge.s32.totalorder %s30_s30, 2  ;;  %p311_p2 = scmp.lt.s32.totalorder %s955_s29, 3 }
   0x5   : > { %s1128_s30 = smov (%p32_p1, %s30_s30), 0  ;;  %p312_p3 = pnand %p848_p0, %p311_p2 }
   0x6   : > { %p363_p4 = scmp.lt.s32.totalorder (!%p312_p3), %s947_s27, 1  ;;  %s957_s19 = smov (!%p312_p3), 96  }
   0x7   : > { %315 = sbr.rel (%p312_p3) target bundleno = 1483 (0x5cb), region = 52  ;;  %s958_s20 = smov (!%p312_p3), 112  }
   0x8   : > { %s959_s21 = smov (!%p312_p3), 104   ;;  %s960_s22 = smov (!%p312_p3), 120  }
   0x9   : > { %s961_s23 = smov (!%p312_p3), 88   ;;  %s962_s24 = smov (!%p312_p3), 80  }
   0xa   : > { %s963_s25 = smov (!%p312_p3), 72   ;;  %s964_s26 = smov (!%p312_p3), 8  }
   0xb   : > { %s966_s10 = smov (!%p312_p3), 16  }
   0xc   : > { %s1130_s27 = smov (!%p363_p4, %s947_s27), 1  ;;  %vm395_vm0 = vcmask 64512   ;;  %vm440_vm1 = vcmask 1043456   ;;  %vm647_vm2 = vcmask 130048   ;;  %vm649_vm3 = vcmask 195584  }
   0xd   : > { %s1031_s9 = sshll.u32 %s1130_s27, 2  ;;  %s376_s12 = scalar_lea.vmem %s1118_s2, %s1130_s27  ;;  %vm672_vm4 = vcmask 261120   ;;  %vm732_vm9 = vcmask 257024  }
   0xe   : > { %s373_s15 = scalar_lea.vmem %s1117_s1, %s1031_s9  ;;  %s369_s18 = scalar_lea.vmem %s1116_s0, %s1031_s9  ;;  %v909_v7 = vld [vmem:[%s376_s12] ss:$0 sm:$0xff] }
   0xf   : > { %v393_v0 = vld [vmem:[%s373_s15] sm:$0xf]  ;;  %s965_s27 = smov 24   ;;  %s383_s17 = scalar_lea.vmem %s1119_s3, %s1031_s9 }
  0x10   : > { %v400_v1 = vsel %vm395_vm0, %v393_v0, 0  ;;  %v392_v2 = vld [vmem:[%s369_s18] sm:$0xf]  ;;  %v433_v3 = vunpack.c.l.b16 %v393_v0 }
  0x11   : > { %409 = vmatpush.bf16.xpose.msra.mxu0 %v400_v1  ;;  %v458_v5 = vunpack.c.l.b16 %v392_v2 }
  0x12   : > { %v1046_v4 = vpack.c.b16 %v433_v3, %v433_v3 }
  0x13   : > { %v459_v6 = vpack.c.b16 %v458_v5, %v458_v5 }
  0x14   : > { %435 = vrot.lane.b32.xlu2 %v1046_v4, %s957_s19 }
  0x18   : > { %853 = vmatmul.msk.bf16.vlgmr.msra.gmra.mxu0 %vm395_vm0, %v392_v2 }
  0x1c   : > { %520 = vrot.lane.b32.xlu2 %v1046_v4, %s958_s20 }
  0x24   : > { %578 = vrot.lane.b32.xlu2 %v1046_v4, %s959_s21 }
  0x2c   : > { %518 = vrot.lane.b32.xlu2 %v459_v6, %s958_s20 }
  0x6e   : > { %v436_v13 = vpop.permute.xlu2 %435 }
  0x6f   : > { %v442_v24 = vsel %vm440_vm1, %v436_v13, 0 }
  0x70   : > { %451 = vmatpush.bf16.msra.mxu1 %v442_v24 }
  0x76   : > { %v521_v14 = vpop.permute.xlu2 %520 }
  0x77   : > { %v526_v25 = vsel %vm395_vm0, %v521_v14, 0 }
  0x78   : > { %535 = vmatpush.bf16.xpose.msrb.mxu1 %v526_v25  ;;  %v873_v25 = vld [vmem:[%s1120_s4 + $0x8] sm:$0xff] }
  0x7e   : > { %v579_v18 = vpop.permute.xlu2 %578 }
  0x7f   : > { %v584_v19 = vsel %vm395_vm0, %v579_v18, 0 }
  0x80   : > { %593 = vmatpush.bf16.xpose.msrb.mxu0 %v584_v19 }
  0x86   : > { %v519_v32 = vpop.permute.xlu2 %518 }
  0x95   : > { %v411_v8 = vpop.f32.mrf.mxu0 }
  0x96   : > { %v415_v9 = vmul.f32 0.35355338, %v411_v8 }
  0x98   : > { %v419_v10 = vadd.f32 %v909_v7, %v415_v9 }
  0x9a   : > { %v420_v11 = vsel %vm395_vm0, %v419_v10, -inf }
  0x9b   : > { %421 = vmax.xlane.f32.xlu0 %v420_v11 }
  0x9d   : > { %v413_v12 = vpop.f32.mrf.mxu0 }
  0xaf   : > { %462 = vrot.lane.b32.xlu0 %v1046_v4, %s960_s22 }
  0xb7   : > { %576 = vrot.lane.b32.xlu0 %v459_v6, %s959_s21 }
 0x10e   : > { %v422_v15 = vpop.xlane.xlu0 %421 }
 0x10f   : > { %v423_v16 = vsub.f32 %v419_v10, %v422_v15 }
 0x111   : > { %v424_v17 = vmul.f32 1.442695, %v423_v16 }
 0x113   : > { %913 = vpow2.f32 %v424_v17 }
 0x119   : > { %v914_v20 = vpop.eup %913 }
 0x11a   : > { %v426_v21 = vsel %vm395_vm0, %v914_v20, 0.0 }
 0x11b   : > { %427 = vadd.xlane.f32.xlu1 %v426_v21 }
 0x121   : > { %v463_v22 = vpop.permute.xlu0 %462 }
 0x122   : > { %v468_v26 = vsel %vm395_vm0, %v463_v22, 0 }
 0x123   : > { %477 = vmatpush.bf16.xpose.msra.mxu2 %v468_v26  ;;  %v872_v26 = vld [vmem:[%s1120_s4] sm:$0xff] }
 0x129   : > { %v577_v23 = vpop.permute.xlu0 %576 }
 0x12a   : > { %859 = vmatmul.msk.bf16.vlgmr.msrb.gmra.mxu0 %vm395_vm0, %v577_v23 }
 0x134   : > { %460 = vrot.lane.b32.xlu1 %v459_v6, %s960_s22 }
 0x18e   : > { %v428_v27 = vpop.xlane.xlu1 %427 }
 0x18f   : > { %915 = vrcp.f32 %v428_v27 }
 0x195   : > { %v916_v28 = vpop.eup %915 }
 0x196   : > { %v430_v29 = vmul.f32 %v916_v28, %v914_v20 }
 0x198   : > { %v431_v30 = vpack.c.bf16 %v430_v29, %v430_v29 }
 0x19a   : > { %854 = vmatmul.msk.bf16.vlgmr.msra.gmra.mxu1 %vm395_vm0, %v431_v30 }
 0x19b   : > { %682 = vmatpush.bf16.msra.mxu1 %v873_v25 }
 0x19f   : > { %683 = vmatpush.bf16.msra.mxu1 %v872_v26 }
 0x1a6   : > { %v461_v31 = vpop.permute.xlu1 %460 }
 0x1a7   : > { %855 = vmatmul.msk.bf16.vlgmr.msra.gmra.mxu2 %vm395_vm0, %v461_v31  ;;  %v595_v33 = vpop.f32.mrf.mxu0 }
 0x1a8   : > { %v599_v34 = vmul.f32 0.35355338, %v595_v33 }
 0x1aa   : > { %857 = vmatmul.msk.bf16.vlgmr.msrb.gmra.mxu1 %vm395_vm0, %v519_v32  ;;  %v600_v35 = vadd.f32 %v909_v7, %v599_v34  ;;  %v689_v34 = vld [vmem:[%s383_s17] sm:$0xf] }
 0x1ac   : > { %v601_v36 = vsel %vm395_vm0, %v600_v35, -inf }
 0x1ad   : > { %602 = vmax.xlane.f32.xlu0 %v601_v36  ;;  %v690_v36 = vunpack.c.l.bf16 %v689_v34 }
 0x1af   : > { %v597_v37 = vpop.f32.mrf.mxu0 }
 0x217   : > { %v1063_v38 = vpop.f32.mrf.mxu1 }
 0x21f   : > { %v455_v39 = vpop.f32.mrf.mxu1 }
 0x220   : > { %v603_v52 = vpop.xlane.xlu0 %602 }
 0x221   : > { %v604_v56 = vsub.f32 %v600_v35, %v603_v52  ;;  %v910_v35 = vld [vmem:[%s1121_s5] ss:$0 sm:$0xff] }
 0x223   : > { %v605_v58 = vmul.f32 1.442695, %v604_v56 }
 0x227   : > { %v537_v40 = vpop.f32.mrf.mxu1 }
 0x228   : > { %v541_v41 = vmul.f32 0.35355338, %v537_v40 }
 0x22a   : > { %v479_v42 = vpop.f32.mrf.mxu2  ;;  %v542_v43 = vadd.f32 %v909_v7, %v541_v41 }
 0x22b   : > { %v483_v44 = vmul.f32 0.35355338, %v479_v42  ;;  %v967_v42 = vmov 32.0  }
 0x22c   : > { %v543_v45 = vsel %vm395_vm0, %v542_v43, -inf }
 0x22d   : > { %544 = vmax.xlane.f32.xlu1 %v543_v45  ;;  %v484_v46 = vadd.f32 %v909_v7, %v483_v44 }
 0x22f   : > { %v539_v47 = vpop.f32.mrf.mxu1  ;;  %v485_v48 = vsel %vm395_vm0, %v484_v46, -inf }
 0x230   : > { %486 = vmax.xlane.f32.xlu2 %v485_v48 }
 0x232   : > { %v481_v49 = vpop.f32.mrf.mxu2 }
 0x246   : > { %497 = vrot.lane.b32.xlu1 %v1046_v4, %s961_s23 }
 0x2a0   : > { %v545_v50 = vpop.xlane.xlu1 %544 }
 0x2a1   : > { %v546_v51 = vsub.f32 %v542_v43, %v545_v50 }
 0x2a3   : > { %v547_v53 = vmul.f32 1.442695, %v546_v51  ;;  %v487_v54 = vpop.xlane.xlu2 %486 }
 0x2a4   : > { %v488_v55 = vsub.f32 %v484_v46, %v487_v54 }
 0x2a5   : > { %917 = vpow2.f32 %v547_v53 }
 0x2a6   : > { %v489_v57 = vmul.f32 1.442695, %v488_v55 }
 0x2a8   : > { %919 = vpow2.f32 %v489_v57 }
 0x2a9   : > { %921 = vpow2.f32 %v605_v58 }
 0x2ab   : > { %v918_v59 = vpop.eup %917 }
 0x2ac   : > { %v549_v60 = vsel %vm395_vm0, %v918_v59, 0.0 }
 0x2ad   : > { %550 = vadd.xlane.f32.xlu0 %v549_v60 }
 0x2ae   : > { %v920_v61 = vpop.eup %919 }
 0x2af   : > { %v491_v62 = vsel %vm395_vm0, %v920_v61, 0.0  ;;  %v922_v63 = vpop.eup %921 }
 0x2b0   : > { %492 = vadd.xlane.f32.xlu2 %v491_v62  ;;  %v607_v0 = vsel %vm395_vm0, %v922_v63, 0.0 }
 0x2b8   : > { %608 = vadd.xlane.f32.xlu2 %v607_v0  ;;  %v498_v1 = vpop.permute.xlu1 %497 }
 0x2b9   : > { %v503_v2 = vsel %vm440_vm1, %v498_v1, 0  ;;  %v912_v1 = vld [vmem:[%s1123_s7] ss:$0 sm:$0xff] }
 0x2ba   : > { %512 = vmatpush.bf16.msra.mxu3 %v503_v2 }
 0x2c1   : > { %555 = vrot.lane.b32.xlu0 %v1046_v4, %s962_s24 }
 0x2d0   : > { %613 = vrot.lane.b32.xlu2 %v1046_v4, %s963_s25 }
 0x320   : > { %v551_v6 = vpop.xlane.xlu0 %550 }
 0x323   : > { %v493_v3 = vpop.xlane.xlu2 %492 }
 0x324   : > { %923 = vrcp.f32 %v493_v3 }
 0x32a   : > { %v924_v5 = vpop.eup %923 }
 0x32b   : > { %v609_v7 = vpop.xlane.xlu2 %608  ;;  %v495_v8 = vmul.f32 %v924_v5, %v920_v61 }
 0x32c   : > { %925 = vrcp.f32 %v609_v7 }
 0x32d   : > { %v496_v9 = vpack.c.bf16 %v495_v8, %v495_v8  ;;  %927 = vrcp.f32 %v551_v6 }
 0x32e   : > { %929 = vrcp.f32 %v967_v42 }
 0x32f   : > { %856 = vmatmul.msk.bf16.vlgmr.msra.gmra.mxu3 %vm395_vm0, %v496_v9 }
 0x332   : > { %v926_v10 = vpop.eup %925 }
 0x333   : > { %v611_v11 = vmul.f32 %v926_v10, %v922_v63  ;;  %v614_v12 = vpop.permute.xlu2 %613  ;;  %v556_v13 = vpop.permute.xlu0 %555  ;;  %v911_v63 = vld [vmem:[%s1122_s6] ss:$0 sm:$0xff] }
 0x334   : > { %v561_v4 = vsel %vm440_vm1, %v556_v13, 0  ;;  %v619_v14 = vsel %vm440_vm1, %v614_v12, 0  ;;  %v928_v16 = vpop.eup %927 }
 0x335   : > { %570 = vmatpush.bf16.msrb.mxu3 %v561_v4  ;;  %628 = vmatpush.bf16.msrb.mxu2 %v619_v14  ;;  %v612_v15 = vpack.c.bf16 %v611_v11, %v611_v11  ;;  %v553_v17 = vmul.f32 %v928_v16, %v918_v59  ;;  %v930_v43 = vpop.eup %929 }
 0x336   : > { %v698_v44 = vmul.f32 32.0, %v930_v43  ;;  %vm702_vm5 = vweird.f32 %v930_v43 }
 0x337   : > { %v554_v18 = vpack.c.bf16 %v553_v17, %v553_v17 }
 0x338   : > { %860 = vmatmul.msk.bf16.vlgmr.msrb.gmra.mxu2 %vm395_vm0, %v612_v15  ;;  %v699_v45 = vsub.f32 1.0, %v698_v44 }
 0x33a   : > { %v700_v46 = vmul.f32 %v930_v43, %v699_v45 }
 0x33c   : > { %v701_v47 = vadd.f32 %v930_v43, %v700_v46 }
 0x33e   : > { %v703_v48 = vsel %vm702_vm5, %v930_v43, %v701_v47 }
 0x33f   : > { %858 = vmatmul.msk.bf16.vlgmr.msrb.gmra.mxu3 %vm395_vm0, %v554_v18 }
 0x3b2   : > { %v514_v19 = vpop.f32.mrf.mxu3 }
 0x3b3   : > { %635 = vrot.lane.b32.xlu1 %v514_v19, %s964_s26  ;;  %s390_s26 = scalar_lea.vmem %s1124_s8, %s1031_s9 }
 0x3ba   : > { %v516_v20 = vpop.f32.mrf.mxu3 }
 0x3bb   : > { %v630_v21 = vpop.f32.mrf.mxu2 }
 0x3bc   : > { %643 = vrot.lane.b32.xlu1 %v630_v21, %s965_s27 }
 0x3c2   : > { %v572_v22 = vpop.f32.mrf.mxu3 }
 0x3c3   : > { %v632_v23 = vpop.f32.mrf.mxu2  ;;  %639 = vrot.lane.b32.xlu0 %v572_v22, %s966_s10 }
 0x3ca   : > { %v574_v24 = vpop.f32.mrf.mxu3 }
 0x425   : > { %v636_v27 = vpop.permute.xlu1 %635 }
 0x426   : > { %v646_v28 = vsel %vm395_vm0, %v1063_v38, %v636_v27 }
 0x42e   : > { %v644_v30 = vpop.permute.xlu1 %643 }
 0x435   : > { %v640_v29 = vpop.permute.xlu0 %639 }
 0x436   : > { %v648_v31 = vsel %vm647_vm2, %v646_v28, %v640_v29 }
 0x437   : > { %v650_v32 = vsel %vm649_vm3, %v648_v31, %v644_v30 }
 0x438   : > { %v651_v33 = vpack.c.bf16 %v650_v32, %v650_v32 }
 0x43a   : > { %869 = vmatmul.msk.bf16.vlgmr.msra.gmra.mxu1 %vm672_vm4, %v651_v33 }
 0x4b7   : > { %v685_v37 = vpop.f32.mrf.mxu1 }
 0x4b8   : > { %v686_v38 = vadd.f32 %v910_v35, %v685_v37 }
 0x4ba   : > { %v691_v39 = vadd.f32 %v690_v36, %v686_v38 }
 0x4bc   : > { %v694_v40 = vsel %vm672_vm4, %v691_v39, 0.0 }
 0x4bd   : > { %695 = vadd.xlane.f32.xlu2 %v694_v40 }
 0x4bf   : > { %v687_v41 = vpop.f32.mrf.mxu1 }
 0x530   : > { %v696_v49 = vpop.xlane.xlu2 %695 }
 0x531   : > { %v704_v50 = vmul.f32 %v703_v48, %v696_v49 }
 0x533   : > { %v705_v51 = vsub.f32 %v691_v39, %v704_v50 }
 0x535   : > { %v706_v52 = vmul.f32 %v705_v51, %v705_v51 }
 0x537   : > { %v707_v53 = vsel %vm672_vm4, %v706_v52, 0.0 }
 0x538   : > { %708 = vadd.xlane.f32.xlu0 %v707_v53 }
 0x5ab   : > { %v709_v54 = vpop.xlane.xlu0 %708 }
 0x5ac   : > { %v710_v55 = vmul.f32 %v709_v54, %v703_v48 }
 0x5ae   : > { %v711_v56 = vadd.f32 1e-05, %v710_v55 }
 0x5b0   : > { %931 = vrsqrt.f32 %v711_v56  ;;  %vm718_vm7 = vweird.f32 %v711_v56 }
 0x5b6   : > { %v932_v57 = vpop.eup %931 }
 0x5b7   : > { %v713_v58 = vmul.f32 %v932_v57, %v711_v56  ;;  %vm719_vm6 = vweird.f32 %v932_v57 }
 0x5b8   : > { %vm720_vm8 = vmor %vm718_vm7, %vm719_vm6 }
 0x5b9   : > { %v714_v59 = vmul.f32 %v932_v57, %v713_v58 }
 0x5bb   : > { %v715_v60 = vmul.f32 0.5, %v714_v59 }
 0x5bd   : > { %v716_v61 = vsub.f32 1.5, %v715_v60 }
 0x5bf   : > { %v717_v62 = vmul.f32 %v932_v57, %v716_v61 }
 0x5c1   : > { %v721_v0 = vsel %vm720_vm8, %v932_v57, %v717_v62 }
 0x5c2   : > { %v722_v2 = vmul.f32 %v721_v0, %v705_v51 }
 0x5c4   : > { %v726_v3 = vmul.f32 %v911_v63, %v722_v2 }
 0x5c6   : > { %v730_v5 = vadd.f32 %v912_v1, %v726_v3 }
 0x5c8   : > { %v731_v6 = vpack.c.bf16 %v730_v5, %v730_v5 }
 0x5ca   : > { %733 = vst.msk [vmem:[%s390_s26] sm:$0xf] %vm732_vm9, %v731_v6 }
 0x5cb PF: > { %s18_s29 = sadd.s32 1, %s955_s29   ;;  %s1125_s27 = smov %s951_s28 }
 0x5cc   : > { %p15_p5 = scmp.ge.s32.totalorder %s18_s29, 4   ;;  %s1126_s28 = smov %s1128_s30 }
 0x5ce   :  { %17 = sbr.rel (!%p15_p5) target bundleno = 2 (0x2), region = 91 }

// kernel: text_bert_adapter_forward.15
= control target key start
LH: loop header
LB: loop body
LE: loop exit
PB: predicated region body
PF: predicated region fallthrough
CT: control target
= control target key end

     0   :  { %s224_s0 = inlined_call_operand.vmem [shape: f32[2,32], index: 0, kind: input, shape index: {}]   ;;  %s225_s1 = inlined_call_operand.vmem [shape: bf16[32,32], index: 1, kind: input, shape index: {}]   ;;  %s226_s2 = inlined_call_operand.vmem [shape: f32[1,32], index: 2, kind: input, shape index: {}]   ;;  %s227_s3 = inlined_call_operand.vmem [shape: bf16[32,128], index: 3, kind: input, shape index: {}]   ;;  %s228_s4 = inlined_call_operand.vmem [shape: f32[1,128], index: 4, kind: input, shape index: {}]   ;;  %s229_s5 = inlined_call_operand.hbm [shape: f32[2,128], index: 5, kind: output, shape index: {}]  }
   0x1   :  { %v135_v0 = vld [vmem:[%s225_s1 + $0x8] sm:$0xff]  ;;  %v134_v1 = vld [vmem:[%s225_s1] sm:$0xff] }
   0x2   :  { %54 = vmatpush.bf16.msra.mxu0 %v135_v0  ;;  %v22_v2 = vld [vmem:[%s224_s0] sm:$0x3] }
   0x3   :  { %10 = vsyncpa [#allocation3], 0  ;;  %v23_v3 = vpack.c.bf16 %v22_v2, %v22_v2  ;;  %vm44_vm0 = vcmask 261120   ;;  %v137_v4 = vld [vmem:[%s227_s3 + $0x8] sm:$0xff]  ;;  %v136_v5 = vld [vmem:[%s227_s3] sm:$0xff]  ;;  %s169_s30 = smov [#allocation2]  }
   0x4   :  { %92 = vmatpush.bf16.msra.mxu1 %v137_v4  ;;  %v139_v6 = vld [vmem:[%s226_s2] ss:$0 sm:$0xff]  ;;  %s105_s6 = sshll.u32 %s169_s30, 4  ;;  %s107_s8 = sshll.u32 %s229_s5, 4  ;;  %s106_s6 = int_to_ptr.vmem [resolvable:$true] %s105_s6  ;;  %s108_s8 = int_to_ptr.hbm [resolvable:$true] %s107_s8 }
   0x5   :  { %v140_v12 = vld [vmem:[%s228_s4] ss:$0 sm:$0xff] }
   0x6   :  { %55 = vmatpush.bf16.msra.mxu0 %v134_v1 }
   0x8   :  { %93 = vmatpush.bf16.msra.mxu1 %v136_v5 }
   0x9   :  { %124 = vmatmul.msk.bf16.vlgmr.msra.gmra.mxu0 %vm44_vm0, %v23_v3 }
  0x86   :  { %v57_v7 = vpop.f32.mrf.mxu0 }
  0x87   :  { %v58_v8 = vadd.f32 %v139_v6, %v57_v7 }
  0x89   :  { %141 = vtanh.f32 %v58_v8 }
  0x8e   :  { %v59_v9 = vpop.f32.mrf.mxu0 }
  0x8f   :  { %v142_v10 = vpop.eup %141 }
  0x90   :  { %v62_v11 = vpack.c.bf16 %v142_v10, %v142_v10 }
  0x92   :  { %133 = vmatmul.msk.bf16.vlgmr.msra.gmra.mxu1 %vm44_vm0, %v62_v11 }
 0x10f   :  { %v95_v13 = vpop.f32.mrf.mxu1 }
 0x110   :  { %v96_v14 = vadd.f32 %v140_v12, %v95_v13 }
 0x112   :  { %99 = vst [vmem:[#allocation2] sm:$0x3] %v96_v14 }
 0x113   :  { %110 = dma.vmem_to_hbm [thread:$0]  %s106_s6, 32, %s108_s8, [#allocation3]  }
 0x117   :  { %v97_v15 = vpop.f32.mrf.mxu1 }
 0x118   :  { %167 = dma.done.wait [#allocation3], 32  }
 0x119   :  { %168 = vsyncadd [#allocation3], 4294967264 }
 0x11a   :  { %115 = vsyncpa [#allocation3], 1 }

// kernel: text_bert_adapter_forward.11
= control target key start
LH: loop header
LB: loop body
LE: loop exit
PB: predicated region body
PF: predicated region fallthrough
CT: control target
= control target key end

     0   :  { %s790_s17 = smov 0   ;;  %s863_s0 = inlined_call_operand.vmem [shape: bf16[16,32], index: 0, kind: input, shape index: {}]   ;;  %s864_s1 = inlined_call_operand.vmem [shape: bf16[32,64], index: 1, kind: input, shape index: {}]   ;;  %s865_s2 = inlined_call_operand.vmem [shape: f32[1,64], index: 2, kind: input, shape index: {}]   ;;  %s866_s3 = inlined_call_operand.vmem [shape: bf16[64,32], index: 3, kind: input, shape index: {}]   ;;  %s867_s4 = inlined_call_operand.vmem [shape: f32[1,32], index: 4, kind: input, shape index: {}]   ;;  %s868_s5 = inlined_call_operand.vmem [shape: bf16[32,8], index: 5, kind: input, shape index: {}]   ;;  %s869_s6 = inlined_call_operand.vmem [shape: f32[1,8], index: 6, kind: input, shape index: {}]   ;;  %s870_s7 = inlined_call_operand.vmem [shape: bf16[8,32], index: 7, kind: input, shape index: {}]   ;;  %s871_s8 = inlined_call_operand.vmem [shape: f32[1,32], index: 8, kind: input, shape index: {}]   ;;  %s872_s9 = inlined_call_operand.vmem [shape: f32[1,32], index: 9, kind: input, shape index: {}]   ;;  %s873_s10 = inlined_call_operand.vmem [shape: f32[1,32], index: 10, kind: input, shape index: {}]   ;;  %s874_s11 = inlined_call_operand.vmem [shape: bf16[16,32], index: 11, kind: output, shape index: {}]  }
   0x1 LB: > { %s647_s18 = sadd.s32 4294967295, %s727_s17   ;;  %p651_p0 = scmp.ge.s32.totalorder %s727_s17, 1  ;;  %s727_s17 = sphi %s790_s17, %s21_s17  }
   0x2   : > { %p336_p1 = scmp.lt.s32.totalorder %s727_s17, 3 }
   0x4   : > { %p337_p2 = pnand %p651_p0, %p336_p1 }
   0x5   : > { %p374_p3 = scmp.lt.s32.totalorder (!%p337_p2), %s647_s18, 1 }
   0x6   : > { %340 = sbr.rel (%p337_p2) target bundleno = 849 (0x351), region = 64 }
   0xb   : > { %v693_v0 = vld [vmem:[%s864_s1 + $0x8] sm:$0xff]  ;;  %v692_v1 = vld [vmem:[%s864_s1] sm:$0xff]  ;;  %s876_s18 = smov (!%p374_p3, %s647_s18), 1  ;;  %vm404_vm0 = vcmask 261120   ;;  %v697_v3 = vld [vmem:[%s866_s3 + $0x18] sm:$0xff]  ;;  %vm467_vm1 = vcmask 523264  }
   0xc   : > { %414 = vmatpush.bf16.msra.mxu0 %v693_v0  ;;  %s652_s23 = sshll.u32 %s876_s18, 2  ;;  %475 = vmatpush.bf16.msra.mxu1 %v697_v3  ;;  %v696_v4 = vld [vmem:[%s866_s3 + $0x10] sm:$0xff]  ;;  %v695_v5 = vld [vmem:[%s866_s3 + $0x8] sm:$0xff]  ;;  %v694_v6 = vld [vmem:[%s866_s3] sm:$0xff]  ;;  %vm532_vm2 = vcmask 1043456   ;;  %vm528_vm3 = vcmask 64512  }
   0xd   : > { %s377_s26 = scalar_lea.vmem %s863_s0, %s652_s23  ;;  %v699_v7 = vld [vmem:[%s868_s5 + $0x8] sm:$0xff]  ;;  %v709_v8 = vld [vmem:[%s865_s2] ss:$0 sm:$0xff]  ;;  %v729_v44 = vmov 32.0   ;;  %s381_s22 = scalar_lea.vmem %s874_s11, %s652_s23  ;;  %vm592_vm8 = vcmask 257024  }
   0xe   : > { %v383_v2 = vld [vmem:[%s377_s26] sm:$0xf]  ;;  %514 = vmatpush.bf16.msra.mxu2 %v699_v7 }
   0xf   : > { %v698_v22 = vld [vmem:[%s868_s5] sm:$0xff]  ;;  %v550_v38 = vunpack.c.l.bf16 %v383_v2 }
  0x10   : > { %415 = vmatpush.bf16.msra.mxu0 %v692_v1  ;;  %476 = vmatpush.bf16.msra.mxu1 %v696_v4  ;;  %v710_v23 = vld [vmem:[%s867_s4] ss:$0 sm:$0xff] }
  0x11   : > { %v523_v28 = vld [vmem:[%s870_s7] sm:$0xf] }
  0x12   : > { %515 = vmatpush.bf16.msra.mxu2 %v698_v22  ;;  %v534_v29 = vsel %vm532_vm2, %v523_v28, 0  ;;  %v711_v30 = vld [vmem:[%s869_s6] ss:$0 sm:$0xff] }
  0x13   : > { %662 = vmatmul.msk.bf16.vlgmr.msra.gmra.mxu0 %vm404_vm0, %v383_v2  ;;  %543 = vmatpush.bf16.msra.mxu3 %v534_v29  ;;  %v712_v36 = vld [vmem:[%s871_s8] ss:$0 sm:$0xff] }
  0x14   : > { %477 = vmatpush.bf16.msra.mxu1 %v695_v5  ;;  %v713_v1 = vld [vmem:[%s872_s9] ss:$0 sm:$0xff] }
  0x15   : > { %v714_v3 = vld [vmem:[%s873_s10] ss:$0 sm:$0xff] }
  0x18   : > { %478 = vmatpush.bf16.msra.mxu1 %v694_v6 }
  0x90   : > { %v417_v9 = vpop.f32.mrf.mxu0 }
  0x91   : > { %v418_v10 = vadd.f32 %v709_v8, %v417_v9 }
  0x93   : > { %v421_v11 = vmul.f32 %v418_v10, %v418_v10 }
  0x95   : > { %v422_v12 = vmul.f32 %v421_v11, %v418_v10 }
  0x97   : > { %v423_v13 = vmul.f32 0.044715, %v422_v12 }
  0x98   : > { %v419_v14 = vpop.f32.mrf.mxu0 }
  0x99   : > { %v424_v15 = vadd.f32 %v423_v13, %v418_v10 }
  0x9b   : > { %v425_v16 = vmul.f32 0.7978846, %v424_v15 }
  0x9d   : > { %715 = vtanh.f32 %v425_v16 }
  0x9e   : > { %717 = vrcp.f32 %v729_v44 }
  0xa3   : > { %v716_v17 = vpop.eup %715 }
  0xa4   : > { %v427_v18 = vadd.f32 1.0, %v716_v17  ;;  %v718_v45 = vpop.eup %717 }
  0xa5   : > { %v558_v46 = vmul.f32 32.0, %v718_v45  ;;  %vm562_vm4 = vweird.f32 %v718_v45 }
  0xa6   : > { %v428_v19 = vmul.f32 0.5, %v427_v18 }
  0xa7   : > { %v559_v47 = vsub.f32 1.0, %v558_v46 }
  0xa8   : > { %v429_v20 = vmul.f32 %v428_v19, %v418_v10 }
  0xa9   : > { %v560_v48 = vmul.f32 %v718_v45, %v559_v47 }
  0xaa   : > { %v430_v21 = vpack.c.bf16 %v429_v20, %v429_v20 }
  0xab   : > { %v561_v49 = vadd.f32 %v718_v45, %v560_v48 }
  0xac   : > { %679 = vmatmul.msk.bf16.vlgmr.msra.gmra.mxu1 %vm467_vm1, %v430_v21 }
  0xad   : > { %v563_v50 = vsel %vm562_vm4, %v718_v45, %v561_v49 }
 0x129   : > { %v480_v24 = vpop.f32.mrf.mxu1 }
 0x12a   : > { %v481_v25 = vadd.f32 %v710_v23, %v480_v24 }
 0x12c   : > { %v484_v26 = vpack.c.bf16 %v481_v25, %v481_v25 }
 0x12e   : > { %688 = vmatmul.msk.bf16.vlgmr.msra.gmra.mxu2 %vm404_vm0, %v484_v26 }
 0x131   : > { %v482_v27 = vpop.f32.mrf.mxu1 }
 0x1b1   : > { %v517_v31 = vpop.f32.mrf.mxu2 }
 0x1b2   : > { %v518_v32 = vadd.f32 %v711_v30, %v517_v31 }
 0x1b4   : > { %v521_v33 = vmax.f32 %v518_v32, 0.0 }
 0x1b6   : > { %v522_v34 = vpack.c.bf16 %v521_v33, %v521_v33 }
 0x1b8   : > { %689 = vmatmul.msk.bf16.vlgmr.msra.gmra.mxu3 %vm528_vm3, %v522_v34 }
 0x1b9   : > { %v519_v35 = vpop.f32.mrf.mxu2 }
 0x23b   : > { %v545_v37 = vpop.f32.mrf.mxu3 }
 0x23c   : > { %v546_v39 = vadd.f32 %v712_v36, %v545_v37 }
 0x23e   : > { %v549_v40 = vadd.f32 %v546_v39, %v481_v25 }
 0x240   : > { %v551_v41 = vadd.f32 %v550_v38, %v549_v40 }
 0x242   : > { %v554_v42 = vsel %vm404_vm0, %v551_v41, 0.0 }
 0x243   : > { %v547_v43 = vpop.f32.mrf.mxu3  ;;  %555 = vadd.xlane.f32.xlu0 %v554_v42 }
 0x2b6   : > { %v556_v51 = vpop.xlane.xlu0 %555 }
 0x2b7   : > { %v564_v52 = vmul.f32 %v563_v50, %v556_v51 }
 0x2b9   : > { %v565_v53 = vsub.f32 %v551_v41, %v564_v52 }
 0x2bb   : > { %v566_v54 = vmul.f32 %v565_v53, %v565_v53 }
 0x2bd   : > { %v567_v55 = vsel %vm404_vm0, %v566_v54, 0.0 }
 0x2be   : > { %568 = vadd.xlane.f32.xlu0 %v567_v55 }
 0x331   : > { %v569_v56 = vpop.xlane.xlu0 %568 }
 0x332   : > { %v570_v57 = vmul.f32 %v569_v56, %v563_v50 }
 0x334   : > { %v571_v58 = vadd.f32 1e-05, %v570_v57 }
 0x336   : > { %719 = vrsqrt.f32 %v571_v58  ;;  %vm578_vm6 = vweird.f32 %v571_v58 }
 0x33c   : > { %v720_v59 = vpop.eup %719 }
 0x33d   : > { %v573_v60 = vmul.f32 %v720_v59, %v571_v58  ;;  %vm579_vm5 = vweird.f32 %v720_v59 }
 0x33e   : > { %vm580_vm7 = vmor %vm578_vm6, %vm579_vm5 }
 0x33f   : > { %v574_v61 = vmul.f32 %v720_v59, %v573_v60 }
 0x341   : > { %v575_v62 = vmul.f32 0.5, %v574_v61 }
 0x343   : > { %v576_v63 = vsub.f32 1.5, %v575_v62 }
 0x345   : > { %v577_v0 = vmul.f32 %v720_v59, %v576_v63 }
 0x347   : > { %v581_v2 = vsel %vm580_vm7, %v720_v59, %v577_v0 }
 0x348   : > { %v582_v4 = vmul.f32 %v581_v2, %v565_v53 }
 0x34a   : > { %v586_v5 = vmul.f32 %v713_v1, %v582_v4 }
 0x34c   : > { %v590_v6 = vadd.f32 %v714_v3, %v586_v5 }
 0x34e   : > { %v591_v7 = vpack.c.bf16 %v590_v6, %v590_v6 }
 0x350   : > { %593 = vst.msk [vmem:[%s381_s22] sm:$0xf] %vm592_vm8, %v591_v7 }
 0x351 PF: > { %s21_s17 = sadd.s32 1, %s727_s17  }
 0x352   : > { %p18_p4 = scmp.ge.s32.totalorder %s21_s17, 4  }
 0x354   :  { %20 = sbr.rel (!%p18_p4) target bundleno = 1 (0x1), region = 94 }

</bundles_post_ra>
